<compile_context>
chip_gen: v5e
topology: v5e:2x2
jax: 0.10.0
libtpu: 0.0.40
codegen_flags: <defaults>
</compile_context>

<pallas_src>
import functools

import numpy as np
import jax
import jax.numpy as jnp
from jax.experimental import pallas as pl
from jax.experimental.pallas import tpu as pltpu


def _tile_n_for(hw):
    # Small upper-FPN maps: batch more ROIs per grid step to amortize the
    # ~0.35us/step overhead; large fine-level maps: keep the unroll modest.
    return 8 if hw >= 1024 else 32


def _pick_tile_c(c):
    # Channel-chunk size (outer grid axis).  The output's last-dim block must be
    # a multiple of 128 or the full C, hence 128 when it divides C.
    # TODO(synk): on v7x (64 MiB VMEM) prefer TILE_C=64 or a bf16 feature cast
    # for production f32 maps (needs a lane-padded output block / relaxed test tol).
    if c <= 128:
        return c
    return 128 if c % 128 == 0 else c


# ----------------------------- Pallas kernel ------------------------------ #
def _roi_max_kernel(bounds_ref, tile_img_ref, feat_ref, out_ref, *,
                    tile_n, win_h, h, w):
    """Grid = (channel-chunk, ROI-tile); one step = tile_n ROIs x tile_c channels.

    bounds_ref  : SMEM (5 * n_pad,) int32   flat [x1, y1, x2, y2, y0] per ROI
                  (y0 = band start, y0 + win_h <= h, host-guaranteed)
    tile_img_ref: SMEM (num_tiles,) int32   image index per ROI tile (index_map only)
    feat_ref    : VMEM (tile_c, h, w) f32   channel chunk of this tile's image
    out_ref     : VMEM (tile_n, tile_c) f32
    """
    del tile_img_ref  # consumed by the index_map only
    t = pl.program_id(1)                       # ROI-tile axis (innermost)
    row_in_band = jax.lax.broadcasted_iota(jnp.int32, (win_h, w), 0)
    col = jax.lax.broadcasted_iota(jnp.int32, (win_h, w), 1)

    base0 = t * (5 * tile_n)
    for j in range(tile_n):                    # static unroll; rows are independent
        base = base0 + 5 * j
        x1 = bounds_ref[base + 0]
        y1 = bounds_ref[base + 1]
        x2 = bounds_ref[base + 2]
        y2 = bounds_ref[base + 3]
        y0 = bounds_ref[base + 4]
        if h % 8 == 0:                         # host guarantees y0 % 8 == 0 then
            y0 = pl.multiple_of(y0, 8)
        band = feat_ref[:, pl.ds(y0, win_h), :]             # (tile_c, win_h, w)
        row = y0 + row_in_band
        mask = (row >= y1) & (row < y2) & (col >= x1) & (col < x2)   # (win_h, w)
        # Scalar -inf fill (no materialized constant); mask broadcasts over channels.
        # NOTE: a degenerate window (beyond the (0,0) fixup) yields a -inf row
        # here, whereas the PyTorch reference would raise on an empty slice.
        masked = jnp.where(mask[None, :, :], band, -jnp.inf)
        r = jnp.max(jnp.max(masked, axis=-1), axis=-1)      # (tile_c,)
        out_ref[j, :] = r.astype(out_ref.dtype)             # direct row store


def roi_maxpool_level(feat_nchw, bounds_flat, tile_img, *, tile_n, win_h):
    """feat_nchw: (num_images, C, H, W) f32; bounds_flat: (5*n_pad,) i32;
    tile_img: (n_pad // tile_n,) i32 -> (n_pad, C) per-ROI channel maxima."""
    num_images, C, H, W = feat_nchw.shape
    n_pad_total = bounds_flat.shape[0] // 5
    num_tiles = n_pad_total // tile_n
    tile_c = _pick_tile_c(C)
    num_c_tiles = C // tile_c

    kernel = functools.partial(_roi_max_kernel, tile_n=tile_n, win_h=win_h, h=H, w=W)

    # Scoped-VMEM budget: double-buffered feature chunk + output slab + slack,
    # capped at 64 MiB so it stays safe on v7x (physical VMEM 64 MiB per TC).
    # TODO(synk): per-generation tuning (raise toward 96 MiB on v5e/v6e).
    itemsize = np.dtype(feat_nchw.dtype).itemsize
    feat_block = tile_c * H * W * itemsize
    out_block = tile_n * tile_c * itemsize
    vmem_limit = int(min(64 << 20,
                         max(32 << 20, 4 * feat_block + 4 * out_block + (1 << 20))))

    return pl.pallas_call(
        kernel,
        out_shape=jax.ShapeDtypeStruct((n_pad_total, C), feat_nchw.dtype),
        grid_spec=pltpu.PrefetchScalarGridSpec(
            num_scalar_prefetch=2,                     # bounds + tile->image table
            grid=(num_c_tiles, num_tiles),             # channel chunks outer, ROI tiles inner
            in_specs=[
                # Consecutive ROI tiles of one image keep this block index fixed,
                # so each (image, channel-chunk) slab is DMA'd exactly once.
                pl.BlockSpec((pl.Squeezed(), tile_c, H, W),
                             lambda c, t, b, ti: (ti[t], c, 0, 0)),
            ],
            out_specs=pl.BlockSpec((tile_n, tile_c), lambda c, t, b, ti: (t, c)),
        ),
        compiler_params=pltpu.CompilerParams(
            dimension_semantics=("parallel", "parallel"),  # disjoint output tiles
            vmem_limit_bytes=vmem_limit,
        ),
    )(bounds_flat, tile_img, feat_nchw)


# ------------------------------ glue (host) -------------------------------- #
def generation_levels(rois_np):
    areas = (rois_np[:, 2] - rois_np[:, 0]) * (rois_np[:, 3] - rois_np[:, 1])
    return [
        np.where(areas <= 2100)[0],
        np.where((areas < 10575) & (areas > 2100))[0],
        np.where(areas >= 10575)[0],
    ]


def _compute_bounds(picked, h, w):
    """Replicates the PyTorch floor/ceil/clamp + per-ROI fixups, vectorized."""
    x1 = np.maximum(np.floor(picked[:, 0] * w).astype(np.int32), 0)
    x2 = np.maximum(np.ceil(picked[:, 2] * w).astype(np.int32), 0)
    y1 = np.maximum(np.floor(picked[:, 1] * h).astype(np.int32), 0)
    y2 = np.maximum(np.ceil(picked[:, 3] * h).astype(np.int32), 0)
    x2 = np.where((x1 == 0) & (x2 == 0), x2 + 1, x2)
    y2 = np.where((y1 == 0) & (y2 == 0), y2 + 1, y2)
    x1 = np.where(x1 >= w, w - 1, x1)
    y1 = np.where(y1 >= h, h - 1, y1)
    return np.stack([x1, y1, x2, y2], axis=1).astype(np.int32)


def roi_pooling_forward(features, roiss, levels=(1,)):
    # TODO(synk): only levels=[1] (AdaptiveMaxPool2d -> 1x1, i.e. global max per
    # ROI window) is implemented; other output sizes need a per-bin grid.
    # The ROI->level partition (torch.where) is data-dependent in shape, so it
    # stays on the host; ROIs are host-side metadata (no device round-trip).
    assert tuple(levels) == (1,)
    scale = np.array([1024.0, 800.0, 1024.0, 800.0], dtype=np.float32)
    num_levels = len(features)
    num_images = len(roiss)

    rois_np_list, per_image_levels, rois_leveled_indices = [], [], []
    for position, rois in enumerate(roiss):
        rois_np = np.asarray(rois, dtype=np.float32)
        rois_np_list.append(rois_np)
        n_rois = rois_np.shape[0]
        lv = generation_levels(rois_np)
        per_image_levels.append(lv)
        # NOTE: reproduces the original `+ position * (len(rois) - 1)` verbatim
        # (latent off-by-one in the PyTorch module). Kept for fidelity.
        rois_leveled_indices.append(
            jnp.asarray(np.concatenate(lv).astype(np.int32)) + position * (n_rois - 1)
        )

    # One fused pallas_call per FPN level, covering all images.
    pooled = {}  # (level, image) -> (n_real, C) device slice
    for lvl in range(num_levels):
        feat_lvl = features[lvl]                       # (num_images, C, H, W)
        _, C, H, W = feat_lvl.shape
        tile_n = _tile_n_for(H * W)

        per_img = []
        for p in range(num_images):
            idx = per_image_levels[p][lvl]
            if len(idx) == 0:
                continue
            picked = rois_np_list[p][idx] / scale
            per_img.append((p, _compute_bounds(picked, H, W)))
        if not per_img:
            continue

        # Per-level bounded row band: the kernel scans only win_h rows per ROI.
        all_b = np.concatenate([b for (_, b) in per_img], axis=0)
        need = int(np.max(all_b[:, 3] - (all_b[:, 1] // 8) * 8))
        win_h = int(min(H, -(-max(need, 1) // 8) * 8))

        table_chunks, tile_imgs, entries = [], [], []
        offset = 0
        for (p, b) in per_img:
            n_real = b.shape[0]
            y0 = np.minimum((b[:, 1] // 8) * 8, H - win_h).astype(np.int32)
            tbl = np.concatenate([b, y0[:, None]], axis=1)            # (n_real, 5)
            n_pad = -(-n_real // tile_n) * tile_n
            pad = np.tile(np.array([[0, 0, 1, 1, 0]], np.int32), (n_pad - n_real, 1))
            table_chunks.append(np.concatenate([tbl, pad], axis=0))
            tile_imgs.extend([p] * (n_pad // tile_n))
            entries.append((p, offset, n_real))
            offset += n_pad

        bounds_flat = jnp.asarray(
            np.concatenate(table_chunks, axis=0).reshape(-1).astype(np.int32)
        )
        tile_img = jnp.asarray(np.array(tile_imgs, dtype=np.int32))
        out = roi_maxpool_level(feat_lvl, bounds_flat, tile_img,
                                tile_n=tile_n, win_h=win_h)           # (n_pad_total, C)
        for (p, off, n_real) in entries:
            pooled[(lvl, p)] = out[off:off + n_real]

    image_extraction = []
    for p in range(num_images):
        parts = [pooled[(lvl, p)] for lvl in range(num_levels) if (lvl, p) in pooled]
        n_rois = rois_np_list[p].shape[0]
        image_extraction.append(jnp.concatenate(parts, axis=0).reshape(n_rois, -1))
    return image_extraction, jnp.concatenate(rois_leveled_indices)


# ------------------------------ reference ---------------------------------- #
def _numpy_reference(features, roiss):
    scale = np.array([1024.0, 800.0, 1024.0, 800.0], dtype=np.float32)
    out = []
    for position, rois in enumerate(roiss):
        rois_np = np.asarray(rois, dtype=np.float32)
        rois_levels = generation_levels(rois_np)
        rows = []
        for index, idx in enumerate(rois_levels):
            if len(idx) == 0:
                continue
            feat = np.asarray(features[index][position])
            _, h, w = feat.shape
            b = _compute_bounds(rois_np[idx] / scale, h, w)
            for (x1, y1, x2, y2) in b:
                rows.append(feat[:, y1:y2, x1:x2].max(axis=(1, 2)))
        out.append(np.stack(rows, axis=0))
    return out


# --------------------------------- main ------------------------------------ #
if __name__ == "__main__":
    key = jax.random.PRNGKey(0)
    num_images, C = 2, 4
    level_hw = [(32, 32), (16, 16), (8, 8)]
    keys = jax.random.split(key, 3 + num_images)
    features = [
        jax.random.normal(keys[l], (num_images, C, h, w), dtype=jnp.float32)
        for l, (h, w) in enumerate(level_hw)
    ]

    # 6 ROIs per image in 1024x800 image coordinates: two per area bucket
    # (small <=2100, medium, large >=10575) so every FPN level is exercised.
    sizes = np.array(
        [[40, 40], [30, 50], [80, 80], [90, 70], [150, 150], [200, 120]],
        dtype=np.float32,
    )
    roiss = []
    for p in range(num_images):
        u = np.asarray(jax.random.uniform(keys[3 + p], (6, 2)))
        x1 = u[:, 0] * (1024.0 - sizes[:, 0])
        y1 = u[:, 1] * (800.0 - sizes[:, 1])
        rois = np.stack([x1, y1, x1 + sizes[:, 0], y1 + sizes[:, 1]], axis=1)
        roiss.append(rois.astype(np.float32))   # host-side ROI metadata

    image_extraction, leveled_indices = roi_pooling_forward(features, roiss)
    image_extraction = [jax.block_until_ready(x) for x in image_extraction]
    leveled_indices = jax.block_until_ready(leveled_indices)

    ref = _numpy_reference(features, roiss)
    for got, want in zip(image_extraction, ref):
        assert got.shape == want.shape
        np.testing.assert_allclose(np.asarray(got), want, rtol=1e-6, atol=1e-6)
    assert leveled_indices.shape == (sum(r.shape[0] for r in roiss),)

    print("KERNEL_OK")
</pallas_src>

<mosaic_0001>
module attributes {stable_mosaic.version = 11 : i64} {
  func.func @_roi_max_kernel(%arg0: i32, %arg1: i32, %arg2: memref<80xi32, #tpu.memory_space<smem>>, %arg3: memref<2xi32, #tpu.memory_space<smem>>, %arg4: memref<1x4x32x32xf32, #tpu.memory_space<vmem>>, %arg5: memref<8x4xf32, #tpu.memory_space<vmem>>) attributes {dimension_semantics = [#tpu.dimension_semantics<parallel>, #tpu.dimension_semantics<parallel>], iteration_bounds = array<i64: 1, 2>, scalar_prefetch = 2 : i64, scratch_operands = 0 : i64, tpu.core_type = #tpu.core_type<tc>, window_params = [{transform_indices = @transform_0, window_bounds = array<i64: 1, 4, 32, 32>}, {transform_indices = @transform_1, window_bounds = array<i64: 8, 4>}]} {
    %0 = tpu.iota {dimensions = array<i32: 0>} : vector<16x32xi32>
    %1 = tpu.iota {dimensions = array<i32: 1>} : vector<16x32xi32>
    %c40_i32 = arith.constant 40 : i32
    %2 = arith.muli %arg1, %c40_i32 : i32
    %c0_i32 = arith.constant 0 : i32
    %3 = arith.addi %2, %c0_i32 : i32
    %c0_i32_0 = arith.constant 0 : i32
    %4 = arith.addi %3, %c0_i32_0 : i32
    %5 = arith.index_cast %4 : i32 to index
    %6 = memref.load %arg2[%5] : memref<80xi32, #tpu.memory_space<smem>>
    %c1_i32 = arith.constant 1 : i32
    %7 = arith.addi %3, %c1_i32 : i32
    %8 = arith.index_cast %7 : i32 to index
    %9 = memref.load %arg2[%8] : memref<80xi32, #tpu.memory_space<smem>>
    %c2_i32 = arith.constant 2 : i32
    %10 = arith.addi %3, %c2_i32 : i32
    %11 = arith.index_cast %10 : i32 to index
    %12 = memref.load %arg2[%11] : memref<80xi32, #tpu.memory_space<smem>>
    %c3_i32 = arith.constant 3 : i32
    %13 = arith.addi %3, %c3_i32 : i32
    %14 = arith.index_cast %13 : i32 to index
    %15 = memref.load %arg2[%14] : memref<80xi32, #tpu.memory_space<smem>>
    %c4_i32 = arith.constant 4 : i32
    %16 = arith.addi %3, %c4_i32 : i32
    %17 = arith.index_cast %16 : i32 to index
    %18 = memref.load %arg2[%17] : memref<80xi32, #tpu.memory_space<smem>>
    %19 = tpu.assume_multiple %18, 8 : i32
    %c0 = arith.constant 0 : index
    %c0_1 = arith.constant 0 : index
    %20 = arith.index_cast %19 : i32 to index
    %c0_2 = arith.constant 0 : index
    %21 = vector.load %arg4[%c0, %c0_1, %20, %c0_2] : memref<1x4x32x32xf32, #tpu.memory_space<vmem>>, vector<1x4x16x32xf32>
    %22 = vector.shape_cast %21 : vector<1x4x16x32xf32> to vector<4x16x32xf32>
    %23 = vector.broadcast %19 : i32 to vector<16x32xi32>
    %24 = arith.addi %23, %0 : vector<16x32xi32>
    %25 = vector.broadcast %9 : i32 to vector<16x32xi32>
    %26 = arith.cmpi sge, %24, %25 : vector<16x32xi32>
    %27 = vector.broadcast %15 : i32 to vector<16x32xi32>
    %28 = arith.cmpi slt, %24, %27 : vector<16x32xi32>
    %29 = arith.andi %26, %28 : vector<16x32xi1>
    %30 = vector.broadcast %6 : i32 to vector<16x32xi32>
    %31 = arith.cmpi sge, %1, %30 : vector<16x32xi32>
    %32 = arith.andi %29, %31 : vector<16x32xi1>
    %33 = vector.broadcast %12 : i32 to vector<16x32xi32>
    %34 = arith.cmpi slt, %1, %33 : vector<16x32xi32>
    %35 = arith.andi %32, %34 : vector<16x32xi1>
    %36 = vector.shape_cast %35 : vector<16x32xi1> to vector<1x16x32xi1>
    %cst = arith.constant 0xFF800000 : f32
    %37 = vector.shape_cast %36 : vector<1x16x32xi1> to vector<1x16x32xi1>
    %38 = vector.broadcast %37 : vector<1x16x32xi1> to vector<4x16x32xi1>
    %39 = vector.broadcast %cst : f32 to vector<4x16x32xf32>
    %40 = arith.select %38, %22, %39 : vector<4x16x32xi1>, vector<4x16x32xf32>
    %cst_3 = arith.constant dense<0xFF800000> : vector<4x16xf32>
    %41 = vector.multi_reduction <maximumf>, %40, %cst_3 [2] : vector<4x16x32xf32> to vector<4x16xf32>
    %cst_4 = arith.constant dense<0xFF800000> : vector<4xf32>
    %42 = vector.multi_reduction <maximumf>, %41, %cst_4 [1] : vector<4x16xf32> to vector<4xf32>
    %c0_5 = arith.constant 0 : index
    %c0_6 = arith.constant 0 : index
    %43 = vector.load %arg5[%c0_5, %c0_6] : memref<8x4xf32, #tpu.memory_space<vmem>>, vector<1x4xf32>
    %44 = vector.shape_cast %43 : vector<1x4xf32> to vector<4xf32>
    %45 = vector.shape_cast %42 : vector<4xf32> to vector<1x4xf32>
    tpu.vector_store %arg5[%c0_5, %c0_6], %45 {strides = array<i32>} : memref<8x4xf32, #tpu.memory_space<vmem>>, vector<1x4xf32>,
    %c5_i32 = arith.constant 5 : i32
    %46 = arith.addi %2, %c5_i32 : i32
    %c0_i32_7 = arith.constant 0 : i32
    %47 = arith.addi %46, %c0_i32_7 : i32
    %48 = arith.index_cast %47 : i32 to index
    %49 = memref.load %arg2[%48] : memref<80xi32, #tpu.memory_space<smem>>
    %c1_i32_8 = arith.constant 1 : i32
    %50 = arith.addi %46, %c1_i32_8 : i32
    %51 = arith.index_cast %50 : i32 to index
    %52 = memref.load %arg2[%51] : memref<80xi32, #tpu.memory_space<smem>>
    %c2_i32_9 = arith.constant 2 : i32
    %53 = arith.addi %46, %c2_i32_9 : i32
    %54 = arith.index_cast %53 : i32 to index
    %55 = memref.load %arg2[%54] : memref<80xi32, #tpu.memory_space<smem>>
    %c3_i32_10 = arith.constant 3 : i32
    %56 = arith.addi %46, %c3_i32_10 : i32
    %57 = arith.index_cast %56 : i32 to index
    %58 = memref.load %arg2[%57] : memref<80xi32, #tpu.memory_space<smem>>
    %c4_i32_11 = arith.constant 4 : i32
    %59 = arith.addi %46, %c4_i32_11 : i32
    %60 = arith.index_cast %59 : i32 to index
    %61 = memref.load %arg2[%60] : memref<80xi32, #tpu.memory_space<smem>>
    %62 = tpu.assume_multiple %61, 8 : i32
    %c0_12 = arith.constant 0 : index
    %c0_13 = arith.constant 0 : index
    %63 = arith.index_cast %62 : i32 to index
    %c0_14 = arith.constant 0 : index
    %64 = vector.load %arg4[%c0_12, %c0_13, %63, %c0_14] : memref<1x4x32x32xf32, #tpu.memory_space<vmem>>, vector<1x4x16x32xf32>
    %65 = vector.shape_cast %64 : vector<1x4x16x32xf32> to vector<4x16x32xf32>
    %66 = vector.broadcast %62 : i32 to vector<16x32xi32>
    %67 = arith.addi %66, %0 : vector<16x32xi32>
    %68 = vector.broadcast %52 : i32 to vector<16x32xi32>
    %69 = arith.cmpi sge, %67, %68 : vector<16x32xi32>
    %70 = vector.broadcast %58 : i32 to vector<16x32xi32>
    %71 = arith.cmpi slt, %67, %70 : vector<16x32xi32>
    %72 = arith.andi %69, %71 : vector<16x32xi1>
    %73 = vector.broadcast %49 : i32 to vector<16x32xi32>
    %74 = arith.cmpi sge, %1, %73 : vector<16x32xi32>
    %75 = arith.andi %72, %74 : vector<16x32xi1>
    %76 = vector.broadcast %55 : i32 to vector<16x32xi32>
    %77 = arith.cmpi slt, %1, %76 : vector<16x32xi32>
    %78 = arith.andi %75, %77 : vector<16x32xi1>
    %79 = vector.shape_cast %78 : vector<16x32xi1> to vector<1x16x32xi1>
    %cst_15 = arith.constant 0xFF800000 : f32
    %80 = vector.shape_cast %79 : vector<1x16x32xi1> to vector<1x16x32xi1>
    %81 = vector.broadcast %80 : vector<1x16x32xi1> to vector<4x16x32xi1>
    %82 = vector.broadcast %cst_15 : f32 to vector<4x16x32xf32>
    %83 = arith.select %81, %65, %82 : vector<4x16x32xi1>, vector<4x16x32xf32>
    %cst_16 = arith.constant dense<0xFF800000> : vector<4x16xf32>
    %84 = vector.multi_reduction <maximumf>, %83, %cst_16 [2] : vector<4x16x32xf32> to vector<4x16xf32>
    %cst_17 = arith.constant dense<0xFF800000> : vector<4xf32>
    %85 = vector.multi_reduction <maximumf>, %84, %cst_17 [1] : vector<4x16xf32> to vector<4xf32>
    %c1 = arith.constant 1 : index
    %c0_18 = arith.constant 0 : index
    %86 = vector.load %arg5[%c1, %c0_18] : memref<8x4xf32, #tpu.memory_space<vmem>>, vector<1x4xf32>
    %87 = vector.shape_cast %86 : vector<1x4xf32> to vector<4xf32>
    %88 = vector.shape_cast %85 : vector<4xf32> to vector<1x4xf32>
    tpu.vector_store %arg5[%c1, %c0_18], %88 {strides = array<i32>} : memref<8x4xf32, #tpu.memory_space<vmem>>, vector<1x4xf32>,
    %c10_i32 = arith.constant 10 : i32
    %89 = arith.addi %2, %c10_i32 : i32
    %c0_i32_19 = arith.constant 0 : i32
    %90 = arith.addi %89, %c0_i32_19 : i32
    %91 = arith.index_cast %90 : i32 to index
    %92 = memref.load %arg2[%91] : memref<80xi32, #tpu.memory_space<smem>>
    %c1_i32_20 = arith.constant 1 : i32
    %93 = arith.addi %89, %c1_i32_20 : i32
    %94 = arith.index_cast %93 : i32 to index
    %95 = memref.load %arg2[%94] : memref<80xi32, #tpu.memory_space<smem>>
    %c2_i32_21 = arith.constant 2 : i32
    %96 = arith.addi %89, %c2_i32_21 : i32
    %97 = arith.index_cast %96 : i32 to index
    %98 = memref.load %arg2[%97] : memref<80xi32, #tpu.memory_space<smem>>
    %c3_i32_22 = arith.constant 3 : i32
    %99 = arith.addi %89, %c3_i32_22 : i32
    %100 = arith.index_cast %99 : i32 to index
    %101 = memref.load %arg2[%100] : memref<80xi32, #tpu.memory_space<smem>>
    %c4_i32_23 = arith.constant 4 : i32
    %102 = arith.addi %89, %c4_i32_23 : i32
    %103 = arith.index_cast %102 : i32 to index
    %104 = memref.load %arg2[%103] : memref<80xi32, #tpu.memory_space<smem>>
    %105 = tpu.assume_multiple %104, 8 : i32
    %c0_24 = arith.constant 0 : index
    %c0_25 = arith.constant 0 : index
    %106 = arith.index_cast %105 : i32 to index
    %c0_26 = arith.constant 0 : index
    %107 = vector.load %arg4[%c0_24, %c0_25, %106, %c0_26] : memref<1x4x32x32xf32, #tpu.memory_space<vmem>>, vector<1x4x16x32xf32>
    %108 = vector.shape_cast %107 : vector<1x4x16x32xf32> to vector<4x16x32xf32>
    %109 = vector.broadcast %105 : i32 to vector<16x32xi32>
    %110 = arith.addi %109, %0 : vector<16x32xi32>
    %111 = vector.broadcast %95 : i32 to vector<16x32xi32>
    %112 = arith.cmpi sge, %110, %111 : vector<16x32xi32>
    %113 = vector.broadcast %101 : i32 to vector<16x32xi32>
    %114 = arith.cmpi slt, %110, %113 : vector<16x32xi32>
    %115 = arith.andi %112, %114 : vector<16x32xi1>
    %116 = vector.broadcast %92 : i32 to vector<16x32xi32>
    %117 = arith.cmpi sge, %1, %116 : vector<16x32xi32>
    %118 = arith.andi %115, %117 : vector<16x32xi1>
    %119 = vector.broadcast %98 : i32 to vector<16x32xi32>
    %120 = arith.cmpi slt, %1, %119 : vector<16x32xi32>
    %121 = arith.andi %118, %120 : vector<16x32xi1>
    %122 = vector.shape_cast %121 : vector<16x32xi1> to vector<1x16x32xi1>
    %cst_27 = arith.constant 0xFF800000 : f32
    %123 = vector.shape_cast %122 : vector<1x16x32xi1> to vector<1x16x32xi1>
    %124 = vector.broadcast %123 : vector<1x16x32xi1> to vector<4x16x32xi1>
    %125 = vector.broadcast %cst_27 : f32 to vector<4x16x32xf32>
    %126 = arith.select %124, %108, %125 : vector<4x16x32xi1>, vector<4x16x32xf32>
    %cst_28 = arith.constant dense<0xFF800000> : vector<4x16xf32>
    %127 = vector.multi_reduction <maximumf>, %126, %cst_28 [2] : vector<4x16x32xf32> to vector<4x16xf32>
    %cst_29 = arith.constant dense<0xFF800000> : vector<4xf32>
    %128 = vector.multi_reduction <maximumf>, %127, %cst_29 [1] : vector<4x16xf32> to vector<4xf32>
    %c2 = arith.constant 2 : index
    %c0_30 = arith.constant 0 : index
    %129 = vector.load %arg5[%c2, %c0_30] : memref<8x4xf32, #tpu.memory_space<vmem>>, vector<1x4xf32>
    %130 = vector.shape_cast %129 : vector<1x4xf32> to vector<4xf32>
    %131 = vector.shape_cast %128 : vector<4xf32> to vector<1x4xf32>
    tpu.vector_store %arg5[%c2, %c0_30], %131 {strides = array<i32>} : memref<8x4xf32, #tpu.memory_space<vmem>>, vector<1x4xf32>,
    %c15_i32 = arith.constant 15 : i32
    %132 = arith.addi %2, %c15_i32 : i32
    %c0_i32_31 = arith.constant 0 : i32
    %133 = arith.addi %132, %c0_i32_31 : i32
    %134 = arith.index_cast %133 : i32 to index
    %135 = memref.load %arg2[%134] : memref<80xi32, #tpu.memory_space<smem>>
    %c1_i32_32 = arith.constant 1 : i32
    %136 = arith.addi %132, %c1_i32_32 : i32
    %137 = arith.index_cast %136 : i32 to index
    %138 = memref.load %arg2[%137] : memref<80xi32, #tpu.memory_space<smem>>
    %c2_i32_33 = arith.constant 2 : i32
    %139 = arith.addi %132, %c2_i32_33 : i32
    %140 = arith.index_cast %139 : i32 to index
    %141 = memref.load %arg2[%140] : memref<80xi32, #tpu.memory_space<smem>>
    %c3_i32_34 = arith.constant 3 : i32
    %142 = arith.addi %132, %c3_i32_34 : i32
    %143 = arith.index_cast %142 : i32 to index
    %144 = memref.load %arg2[%143] : memref<80xi32, #tpu.memory_space<smem>>
    %c4_i32_35 = arith.constant 4 : i32
    %145 = arith.addi %132, %c4_i32_35 : i32
    %146 = arith.index_cast %145 : i32 to index
    %147 = memref.load %arg2[%146] : memref<80xi32, #tpu.memory_space<smem>>
    %148 = tpu.assume_multiple %147, 8 : i32
    %c0_36 = arith.constant 0 : index
    %c0_37 = arith.constant 0 : index
    %149 = arith.index_cast %148 : i32 to index
    %c0_38 = arith.constant 0 : index
    %150 = vector.load %arg4[%c0_36, %c0_37, %149, %c0_38] : memref<1x4x32x32xf32, #tpu.memory_space<vmem>>, vector<1x4x16x32xf32>
    %151 = vector.shape_cast %150 : vector<1x4x16x32xf32> to vector<4x16x32xf32>
    %152 = vector.broadcast %148 : i32 to vector<16x32xi32>
    %153 = arith.addi %152, %0 : vector<16x32xi32>
    %154 = vector.broadcast %138 : i32 to vector<16x32xi32>
    %155 = arith.cmpi sge, %153, %154 : vector<16x32xi32>
    %156 = vector.broadcast %144 : i32 to vector<16x32xi32>
    %157 = arith.cmpi slt, %153, %156 : vector<16x32xi32>
    %158 = arith.andi %155, %157 : vector<16x32xi1>
    %159 = vector.broadcast %135 : i32 to vector<16x32xi32>
    %160 = arith.cmpi sge, %1, %159 : vector<16x32xi32>
    %161 = arith.andi %158, %160 : vector<16x32xi1>
    %162 = vector.broadcast %141 : i32 to vector<16x32xi32>
    %163 = arith.cmpi slt, %1, %162 : vector<16x32xi32>
    %164 = arith.andi %161, %163 : vector<16x32xi1>
    %165 = vector.shape_cast %164 : vector<16x32xi1> to vector<1x16x32xi1>
    %cst_39 = arith.constant 0xFF800000 : f32
    %166 = vector.shape_cast %165 : vector<1x16x32xi1> to vector<1x16x32xi1>
    %167 = vector.broadcast %166 : vector<1x16x32xi1> to vector<4x16x32xi1>
    %168 = vector.broadcast %cst_39 : f32 to vector<4x16x32xf32>
    %169 = arith.select %167, %151, %168 : vector<4x16x32xi1>, vector<4x16x32xf32>
    %cst_40 = arith.constant dense<0xFF800000> : vector<4x16xf32>
    %170 = vector.multi_reduction <maximumf>, %169, %cst_40 [2] : vector<4x16x32xf32> to vector<4x16xf32>
    %cst_41 = arith.constant dense<0xFF800000> : vector<4xf32>
    %171 = vector.multi_reduction <maximumf>, %170, %cst_41 [1] : vector<4x16xf32> to vector<4xf32>
    %c3 = arith.constant 3 : index
    %c0_42 = arith.constant 0 : index
    %172 = vector.load %arg5[%c3, %c0_42] : memref<8x4xf32, #tpu.memory_space<vmem>>, vector<1x4xf32>
    %173 = vector.shape_cast %172 : vector<1x4xf32> to vector<4xf32>
    %174 = vector.shape_cast %171 : vector<4xf32> to vector<1x4xf32>
    tpu.vector_store %arg5[%c3, %c0_42], %174 {strides = array<i32>} : memref<8x4xf32, #tpu.memory_space<vmem>>, vector<1x4xf32>,
    %c20_i32 = arith.constant 20 : i32
    %175 = arith.addi %2, %c20_i32 : i32
    %c0_i32_43 = arith.constant 0 : i32
    %176 = arith.addi %175, %c0_i32_43 : i32
    %177 = arith.index_cast %176 : i32 to index
    %178 = memref.load %arg2[%177] : memref<80xi32, #tpu.memory_space<smem>>
    %c1_i32_44 = arith.constant 1 : i32
    %179 = arith.addi %175, %c1_i32_44 : i32
    %180 = arith.index_cast %179 : i32 to index
    %181 = memref.load %arg2[%180] : memref<80xi32, #tpu.memory_space<smem>>
    %c2_i32_45 = arith.constant 2 : i32
    %182 = arith.addi %175, %c2_i32_45 : i32
    %183 = arith.index_cast %182 : i32 to index
    %184 = memref.load %arg2[%183] : memref<80xi32, #tpu.memory_space<smem>>
    %c3_i32_46 = arith.constant 3 : i32
    %185 = arith.addi %175, %c3_i32_46 : i32
    %186 = arith.index_cast %185 : i32 to index
    %187 = memref.load %arg2[%186] : memref<80xi32, #tpu.memory_space<smem>>
    %c4_i32_47 = arith.constant 4 : i32
    %188 = arith.addi %175, %c4_i32_47 : i32
    %189 = arith.index_cast %188 : i32 to index
    %190 = memref.load %arg2[%189] : memref<80xi32, #tpu.memory_space<smem>>
    %191 = tpu.assume_multiple %190, 8 : i32
    %c0_48 = arith.constant 0 : index
    %c0_49 = arith.constant 0 : index
    %192 = arith.index_cast %191 : i32 to index
    %c0_50 = arith.constant 0 : index
    %193 = vector.load %arg4[%c0_48, %c0_49, %192, %c0_50] : memref<1x4x32x32xf32, #tpu.memory_space<vmem>>, vector<1x4x16x32xf32>
    %194 = vector.shape_cast %193 : vector<1x4x16x32xf32> to vector<4x16x32xf32>
    %195 = vector.broadcast %191 : i32 to vector<16x32xi32>
    %196 = arith.addi %195, %0 : vector<16x32xi32>
    %197 = vector.broadcast %181 : i32 to vector<16x32xi32>
    %198 = arith.cmpi sge, %196, %197 : vector<16x32xi32>
    %199 = vector.broadcast %187 : i32 to vector<16x32xi32>
    %200 = arith.cmpi slt, %196, %199 : vector<16x32xi32>
    %201 = arith.andi %198, %200 : vector<16x32xi1>
    %202 = vector.broadcast %178 : i32 to vector<16x32xi32>
    %203 = arith.cmpi sge, %1, %202 : vector<16x32xi32>
    %204 = arith.andi %201, %203 : vector<16x32xi1>
    %205 = vector.broadcast %184 : i32 to vector<16x32xi32>
    %206 = arith.cmpi slt, %1, %205 : vector<16x32xi32>
    %207 = arith.andi %204, %206 : vector<16x32xi1>
    %208 = vector.shape_cast %207 : vector<16x32xi1> to vector<1x16x32xi1>
    %cst_51 = arith.constant 0xFF800000 : f32
    %209 = vector.shape_cast %208 : vector<1x16x32xi1> to vector<1x16x32xi1>
    %210 = vector.broadcast %209 : vector<1x16x32xi1> to vector<4x16x32xi1>
    %211 = vector.broadcast %cst_51 : f32 to vector<4x16x32xf32>
    %212 = arith.select %210, %194, %211 : vector<4x16x32xi1>, vector<4x16x32xf32>
    %cst_52 = arith.constant dense<0xFF800000> : vector<4x16xf32>
    %213 = vector.multi_reduction <maximumf>, %212, %cst_52 [2] : vector<4x16x32xf32> to vector<4x16xf32>
    %cst_53 = arith.constant dense<0xFF800000> : vector<4xf32>
    %214 = vector.multi_reduction <maximumf>, %213, %cst_53 [1] : vector<4x16xf32> to vector<4xf32>
    %c4 = arith.constant 4 : index
    %c0_54 = arith.constant 0 : index
    %215 = vector.load %arg5[%c4, %c0_54] : memref<8x4xf32, #tpu.memory_space<vmem>>, vector<1x4xf32>
    %216 = vector.shape_cast %215 : vector<1x4xf32> to vector<4xf32>
    %217 = vector.shape_cast %214 : vector<4xf32> to vector<1x4xf32>
    tpu.vector_store %arg5[%c4, %c0_54], %217 {strides = array<i32>} : memref<8x4xf32, #tpu.memory_space<vmem>>, vector<1x4xf32>,
    %c25_i32 = arith.constant 25 : i32
    %218 = arith.addi %2, %c25_i32 : i32
    %c0_i32_55 = arith.constant 0 : i32
    %219 = arith.addi %218, %c0_i32_55 : i32
    %220 = arith.index_cast %219 : i32 to index
    %221 = memref.load %arg2[%220] : memref<80xi32, #tpu.memory_space<smem>>
    %c1_i32_56 = arith.constant 1 : i32
    %222 = arith.addi %218, %c1_i32_56 : i32
    %223 = arith.index_cast %222 : i32 to index
    %224 = memref.load %arg2[%223] : memref<80xi32, #tpu.memory_space<smem>>
    %c2_i32_57 = arith.constant 2 : i32
    %225 = arith.addi %218, %c2_i32_57 : i32
    %226 = arith.index_cast %225 : i32 to index
    %227 = memref.load %arg2[%226] : memref<80xi32, #tpu.memory_space<smem>>
    %c3_i32_58 = arith.constant 3 : i32
    %228 = arith.addi %218, %c3_i32_58 : i32
    %229 = arith.index_cast %228 : i32 to index
    %230 = memref.load %arg2[%229] : memref<80xi32, #tpu.memory_space<smem>>
    %c4_i32_59 = arith.constant 4 : i32
    %231 = arith.addi %218, %c4_i32_59 : i32
    %232 = arith.index_cast %231 : i32 to index
    %233 = memref.load %arg2[%232] : memref<80xi32, #tpu.memory_space<smem>>
    %234 = tpu.assume_multiple %233, 8 : i32
    %c0_60 = arith.constant 0 : index
    %c0_61 = arith.constant 0 : index
    %235 = arith.index_cast %234 : i32 to index
    %c0_62 = arith.constant 0 : index
    %236 = vector.load %arg4[%c0_60, %c0_61, %235, %c0_62] : memref<1x4x32x32xf32, #tpu.memory_space<vmem>>, vector<1x4x16x32xf32>
    %237 = vector.shape_cast %236 : vector<1x4x16x32xf32> to vector<4x16x32xf32>
    %238 = vector.broadcast %234 : i32 to vector<16x32xi32>
    %239 = arith.addi %238, %0 : vector<16x32xi32>
    %240 = vector.broadcast %224 : i32 to vector<16x32xi32>
    %241 = arith.cmpi sge, %239, %240 : vector<16x32xi32>
    %242 = vector.broadcast %230 : i32 to vector<16x32xi32>
    %243 = arith.cmpi slt, %239, %242 : vector<16x32xi32>
    %244 = arith.andi %241, %243 : vector<16x32xi1>
    %245 = vector.broadcast %221 : i32 to vector<16x32xi32>
    %246 = arith.cmpi sge, %1, %245 : vector<16x32xi32>
    %247 = arith.andi %244, %246 : vector<16x32xi1>
    %248 = vector.broadcast %227 : i32 to vector<16x32xi32>
    %249 = arith.cmpi slt, %1, %248 : vector<16x32xi32>
    %250 = arith.andi %247, %249 : vector<16x32xi1>
    %251 = vector.shape_cast %250 : vector<16x32xi1> to vector<1x16x32xi1>
    %cst_63 = arith.constant 0xFF800000 : f32
    %252 = vector.shape_cast %251 : vector<1x16x32xi1> to vector<1x16x32xi1>
    %253 = vector.broadcast %252 : vector<1x16x32xi1> to vector<4x16x32xi1>
    %254 = vector.broadcast %cst_63 : f32 to vector<4x16x32xf32>
    %255 = arith.select %253, %237, %254 : vector<4x16x32xi1>, vector<4x16x32xf32>
    %cst_64 = arith.constant dense<0xFF800000> : vector<4x16xf32>
    %256 = vector.multi_reduction <maximumf>, %255, %cst_64 [2] : vector<4x16x32xf32> to vector<4x16xf32>
    %cst_65 = arith.constant dense<0xFF800000> : vector<4xf32>
    %257 = vector.multi_reduction <maximumf>, %256, %cst_65 [1] : vector<4x16xf32> to vector<4xf32>
    %c5 = arith.constant 5 : index
    %c0_66 = arith.constant 0 : index
    %258 = vector.load %arg5[%c5, %c0_66] : memref<8x4xf32, #tpu.memory_space<vmem>>, vector<1x4xf32>
    %259 = vector.shape_cast %258 : vector<1x4xf32> to vector<4xf32>
    %260 = vector.shape_cast %257 : vector<4xf32> to vector<1x4xf32>
    tpu.vector_store %arg5[%c5, %c0_66], %260 {strides = array<i32>} : memref<8x4xf32, #tpu.memory_space<vmem>>, vector<1x4xf32>,
    %c30_i32 = arith.constant 30 : i32
    %261 = arith.addi %2, %c30_i32 : i32
    %c0_i32_67 = arith.constant 0 : i32
    %262 = arith.addi %261, %c0_i32_67 : i32
    %263 = arith.index_cast %262 : i32 to index
    %264 = memref.load %arg2[%263] : memref<80xi32, #tpu.memory_space<smem>>
    %c1_i32_68 = arith.constant 1 : i32
    %265 = arith.addi %261, %c1_i32_68 : i32
    %266 = arith.index_cast %265 : i32 to index
    %267 = memref.load %arg2[%266] : memref<80xi32, #tpu.memory_space<smem>>
    %c2_i32_69 = arith.constant 2 : i32
    %268 = arith.addi %261, %c2_i32_69 : i32
    %269 = arith.index_cast %268 : i32 to index
    %270 = memref.load %arg2[%269] : memref<80xi32, #tpu.memory_space<smem>>
    %c3_i32_70 = arith.constant 3 : i32
    %271 = arith.addi %261, %c3_i32_70 : i32
    %272 = arith.index_cast %271 : i32 to index
    %273 = memref.load %arg2[%272] : memref<80xi32, #tpu.memory_space<smem>>
    %c4_i32_71 = arith.constant 4 : i32
    %274 = arith.addi %261, %c4_i32_71 : i32
    %275 = arith.index_cast %274 : i32 to index
    %276 = memref.load %arg2[%275] : memref<80xi32, #tpu.memory_space<smem>>
    %277 = tpu.assume_multiple %276, 8 : i32
    %c0_72 = arith.constant 0 : index
    %c0_73 = arith.constant 0 : index
    %278 = arith.index_cast %277 : i32 to index
    %c0_74 = arith.constant 0 : index
    %279 = vector.load %arg4[%c0_72, %c0_73, %278, %c0_74] : memref<1x4x32x32xf32, #tpu.memory_space<vmem>>, vector<1x4x16x32xf32>
    %280 = vector.shape_cast %279 : vector<1x4x16x32xf32> to vector<4x16x32xf32>
    %281 = vector.broadcast %277 : i32 to vector<16x32xi32>
    %282 = arith.addi %281, %0 : vector<16x32xi32>
    %283 = vector.broadcast %267 : i32 to vector<16x32xi32>
    %284 = arith.cmpi sge, %282, %283 : vector<16x32xi32>
    %285 = vector.broadcast %273 : i32 to vector<16x32xi32>
    %286 = arith.cmpi slt, %282, %285 : vector<16x32xi32>
    %287 = arith.andi %284, %286 : vector<16x32xi1>
    %288 = vector.broadcast %264 : i32 to vector<16x32xi32>
    %289 = arith.cmpi sge, %1, %288 : vector<16x32xi32>
    %290 = arith.andi %287, %289 : vector<16x32xi1>
    %291 = vector.broadcast %270 : i32 to vector<16x32xi32>
    %292 = arith.cmpi slt, %1, %291 : vector<16x32xi32>
    %293 = arith.andi %290, %292 : vector<16x32xi1>
    %294 = vector.shape_cast %293 : vector<16x32xi1> to vector<1x16x32xi1>
    %cst_75 = arith.constant 0xFF800000 : f32
    %295 = vector.shape_cast %294 : vector<1x16x32xi1> to vector<1x16x32xi1>
    %296 = vector.broadcast %295 : vector<1x16x32xi1> to vector<4x16x32xi1>
    %297 = vector.broadcast %cst_75 : f32 to vector<4x16x32xf32>
    %298 = arith.select %296, %280, %297 : vector<4x16x32xi1>, vector<4x16x32xf32>
    %cst_76 = arith.constant dense<0xFF800000> : vector<4x16xf32>
    %299 = vector.multi_reduction <maximumf>, %298, %cst_76 [2] : vector<4x16x32xf32> to vector<4x16xf32>
    %cst_77 = arith.constant dense<0xFF800000> : vector<4xf32>
    %300 = vector.multi_reduction <maximumf>, %299, %cst_77 [1] : vector<4x16xf32> to vector<4xf32>
    %c6 = arith.constant 6 : index
    %c0_78 = arith.constant 0 : index
    %301 = vector.load %arg5[%c6, %c0_78] : memref<8x4xf32, #tpu.memory_space<vmem>>, vector<1x4xf32>
    %302 = vector.shape_cast %301 : vector<1x4xf32> to vector<4xf32>
    %303 = vector.shape_cast %300 : vector<4xf32> to vector<1x4xf32>
    tpu.vector_store %arg5[%c6, %c0_78], %303 {strides = array<i32>} : memref<8x4xf32, #tpu.memory_space<vmem>>, vector<1x4xf32>,
    %c35_i32 = arith.constant 35 : i32
    %304 = arith.addi %2, %c35_i32 : i32
    %c0_i32_79 = arith.constant 0 : i32
    %305 = arith.addi %304, %c0_i32_79 : i32
    %306 = arith.index_cast %305 : i32 to index
    %307 = memref.load %arg2[%306] : memref<80xi32, #tpu.memory_space<smem>>
    %c1_i32_80 = arith.constant 1 : i32
    %308 = arith.addi %304, %c1_i32_80 : i32
    %309 = arith.index_cast %308 : i32 to index
    %310 = memref.load %arg2[%309] : memref<80xi32, #tpu.memory_space<smem>>
    %c2_i32_81 = arith.constant 2 : i32
    %311 = arith.addi %304, %c2_i32_81 : i32
    %312 = arith.index_cast %311 : i32 to index
    %313 = memref.load %arg2[%312] : memref<80xi32, #tpu.memory_space<smem>>
    %c3_i32_82 = arith.constant 3 : i32
    %314 = arith.addi %304, %c3_i32_82 : i32
    %315 = arith.index_cast %314 : i32 to index
    %316 = memref.load %arg2[%315] : memref<80xi32, #tpu.memory_space<smem>>
    %c4_i32_83 = arith.constant 4 : i32
    %317 = arith.addi %304, %c4_i32_83 : i32
    %318 = arith.index_cast %317 : i32 to index
    %319 = memref.load %arg2[%318] : memref<80xi32, #tpu.memory_space<smem>>
    %320 = tpu.assume_multiple %319, 8 : i32
    %c0_84 = arith.constant 0 : index
    %c0_85 = arith.constant 0 : index
    %321 = arith.index_cast %320 : i32 to index
    %c0_86 = arith.constant 0 : index
    %322 = vector.load %arg4[%c0_84, %c0_85, %321, %c0_86] : memref<1x4x32x32xf32, #tpu.memory_space<vmem>>, vector<1x4x16x32xf32>
    %323 = vector.shape_cast %322 : vector<1x4x16x32xf32> to vector<4x16x32xf32>
    %324 = vector.broadcast %320 : i32 to vector<16x32xi32>
    %325 = arith.addi %324, %0 : vector<16x32xi32>
    %326 = vector.broadcast %310 : i32 to vector<16x32xi32>
    %327 = arith.cmpi sge, %325, %326 : vector<16x32xi32>
    %328 = vector.broadcast %316 : i32 to vector<16x32xi32>
    %329 = arith.cmpi slt, %325, %328 : vector<16x32xi32>
    %330 = arith.andi %327, %329 : vector<16x32xi1>
    %331 = vector.broadcast %307 : i32 to vector<16x32xi32>
    %332 = arith.cmpi sge, %1, %331 : vector<16x32xi32>
    %333 = arith.andi %330, %332 : vector<16x32xi1>
    %334 = vector.broadcast %313 : i32 to vector<16x32xi32>
    %335 = arith.cmpi slt, %1, %334 : vector<16x32xi32>
    %336 = arith.andi %333, %335 : vector<16x32xi1>
    %337 = vector.shape_cast %336 : vector<16x32xi1> to vector<1x16x32xi1>
    %cst_87 = arith.constant 0xFF800000 : f32
    %338 = vector.shape_cast %337 : vector<1x16x32xi1> to vector<1x16x32xi1>
    %339 = vector.broadcast %338 : vector<1x16x32xi1> to vector<4x16x32xi1>
    %340 = vector.broadcast %cst_87 : f32 to vector<4x16x32xf32>
    %341 = arith.select %339, %323, %340 : vector<4x16x32xi1>, vector<4x16x32xf32>
    %cst_88 = arith.constant dense<0xFF800000> : vector<4x16xf32>
    %342 = vector.multi_reduction <maximumf>, %341, %cst_88 [2] : vector<4x16x32xf32> to vector<4x16xf32>
    %cst_89 = arith.constant dense<0xFF800000> : vector<4xf32>
    %343 = vector.multi_reduction <maximumf>, %342, %cst_89 [1] : vector<4x16xf32> to vector<4xf32>
    %c7 = arith.constant 7 : index
    %c0_90 = arith.constant 0 : index
    %344 = vector.load %arg5[%c7, %c0_90] : memref<8x4xf32, #tpu.memory_space<vmem>>, vector<1x4xf32>
    %345 = vector.shape_cast %344 : vector<1x4xf32> to vector<4xf32>
    %346 = vector.shape_cast %343 : vector<4xf32> to vector<1x4xf32>
    tpu.vector_store %arg5[%c7, %c0_90], %346 {strides = array<i32>} : memref<8x4xf32, #tpu.memory_space<vmem>>, vector<1x4xf32>,
    return
  }
  func.func @transform_0(%arg0: i32, %arg1: i32, %arg2: memref<80xi32, #tpu.memory_space<smem>>, %arg3: memref<2xi32, #tpu.memory_space<smem>>) -> (i32, i32, i32, i32) {
    %0 = arith.index_cast %arg1 : i32 to index
    %1 = memref.load %arg3[%0] : memref<2xi32, #tpu.memory_space<smem>>
    %c0_i32 = arith.constant 0 : i32
    %c0_i32_0 = arith.constant 0 : i32
    %c0_i32_1 = arith.constant 0 : i32
    return %1, %arg0, %c0_i32, %c0_i32_0 : i32, i32, i32, i32
  }
  func.func @transform_1(%arg0: i32, %arg1: i32, %arg2: memref<80xi32, #tpu.memory_space<smem>>, %arg3: memref<2xi32, #tpu.memory_space<smem>>) -> (i32, i32) {
    %c0_i32 = arith.constant 0 : i32
    return %arg1, %arg0 : i32, i32
  }
}

</mosaic_0001>

<bundles_post_ra>
// kernel: tpu_custom_call.1
= control target key start
LH: loop header
LB: loop body
LE: loop exit
PB: predicated region body
PF: predicated region fallthrough
CT: control target
= control target key end

     0   :  { %s1313_s18 = smov [#allocation3]   ;;  %s1314_s19 = smov [#allocation4]   ;;  %s2393_s0 = inlined_call_operand.hbm [shape: s32[80], index: 0, kind: input, shape index: {}]   ;;  %s2394_s2 = inlined_call_operand.hbm [shape: f32[2,4,32,32], index: 2, kind: input, shape index: {}]   ;;  %s2395_s3 = inlined_call_operand.vmem [shape: f32[16,4], index: 3, kind: output, shape index: {}]   ;;  %s2396_s1 = inlined_call_operand.hbm [shape: s32[2], index: 1, kind: input, shape index: {}]  }
   0x1   :  { %s9_s14 = sshll.u32 %s2393_s0, 4  ;;  %s14_s17 = sshll.u32 %s2396_s1, 4  ;;  %s10_s14 = int_to_ptr.hbm [resolvable:$true] %s9_s14  ;;  %s15_s17 = int_to_ptr.hbm [resolvable:$true] %s14_s17 }
   0x2   :  { %12 = dma.hbm_to_smem %s10_s14, 16, %s1313_s18, [#allocation2] }
   0x3   :  { %17 = dma.hbm_to_smem %s15_s17, 16, %s1314_s19, [#allocation2] }
   0x4   :  { %1283 = dma.done.wait [#allocation2], 32 }
   0x5   :  { %1284 = vsyncadd [#allocation2], 4294967264 }
   0x6   :  { %20 = sfence }
   0x7   :  { %21 = vsyncpa [#allocation6], 0 }
   0x8   :  { %23 = vsyncpa [#allocation6 + $0x1], 0  ;;  %s1343_s20 = smov 0   ;;  %s1345_s21 = smov 0  }
   0x9   :  { %s1347_s0 = smov 0   ;;  %s1349_s22 = smov 0  }
   0xa   :  { %s1351_s1 = smov 0   ;;  %s1353_s23 = smov 0  }
   0xb LB: > { %s38_s24 = sadd.s32 1, %s1307_s1  ;;  %s1129_s25 = sadd.s32 4294967295, %s1311_s23   ;;  %s1311_s23 = sphi %s1353_s23, %s29_s23   ;;  %s1307_s1 = sphi %s1351_s1, %s2500_s1   ;;  %s1303_s22 = sphi %s1349_s22, %s2499_s22   ;;  %s1299_s0 = sphi %s1347_s0, %s2498_s0   ;;  %s1295_s21 = sphi %s1345_s21, %s2497_s21   ;;  %s1291_s20 = sphi %s1343_s20, %s2496_s20  }
   0xc   : > { %p39_p0 = scmp.ge.s32.totalorder %s38_s24, 2  ;;  %s45_s26 = sld [smem:[#allocation4 + %s1307_s1]] }
   0xd   : > { %p59_p1 = scmp.ne.s32.totalorder %s1299_s0, %s1295_s21  ;;  %p60_p2 = scmp.eq.s32.totalorder %s1311_s23, 0 }
   0xe   : > { %s2502_s24 = smov (%p39_p0, %s38_s24), 0  ;;  %p65_p3 = scmp.ne.s32.totalorder %s1295_s21, %s1291_s20 }
   0xf   : > { %s46_s27 = sld [smem:[#allocation4 + %s2502_s24]]  ;;  %p66_p4 = scmp.eq.s32.totalorder %s1129_s25, 0 }
  0x10   : > { %s117_s29 = sand.u32 1, %s1299_s0   ;;  %p61_p6 = por %p60_p2, %p59_p1 }
  0x11   : > { %p1381_p5 = por %p66_p4, %p65_p3  ;;  %s52_s30 = sadd.s32 1, %s1299_s0 }
  0x12   : > { %p1152_p7 = scmp.lt.s32.totalorder %s1311_s23, 2  ;;  %s1133_s5 = sshll.u32 %s117_s29, 7 }
  0x13   : > { %s1142_s7 = scalar_select %p61_p6, [#allocation4], [#allocation7] }
  0x14   : > { %p1388_p9 = pnand %p1152_p7, %p61_p6  ;;  %p1136_p10 = scmp.ge.s32.totalorder %s1311_s23, 1 }
  0x15   : > { %s47_s4 = ssub.s32 %s45_s26, %s46_s27  ;;  %s2504_s7 = smov (!%p1152_p7, %s1142_s7), [#allocation8] }
  0x16   : > { %p50_p8 = scmp.eq.s32.totalorder %s47_s4, 0  ;;  %p141_p11 = scmp.lt.s32.totalorder %s1311_s23, 3 }
  0x17   : > { %s1143_s9 = scalar_select %p61_p6, %s1307_s1, 0 }
  0x18   : > { %s1393_s8 = scalar_select %p50_p8, %s1299_s0, %s52_s30  }
  0x19   : > { %s2506_s9 = smov (!%p1152_p7, %s1143_s9), 0  ;;  %s121_s11 = scalar_lea.vmem [#allocation5], %s1133_s5 }
  0x1a   : > { %s122_s10 = sld [smem:[%s2504_s7 + %s2506_s9]]  ;;  %s133_s12 = sshll.u32 %s121_s11, 4  ;;  %s134_s12 = int_to_ptr.vmem [resolvable:$true] %s133_s12 }
  0x1b   : > { %p1398_p12 = pnand %p1136_p10, %p141_p11  ;;  %s118_s19 = scalar_lea.sflag [#allocation6], %s117_s29 }
  0x1c   : > { %p1233_p0 = pneg %p1388_p9  ;;  %s1236_s30 = scalar_lea.hbm %s2394_s2, 256 }
  0x20   : > { %s1141_s14 = sshll.u32 %s122_s10, 7 }
  0x21   : > { %s130_s17 = scalar_lea.hbm %s2394_s2, %s1141_s14 }
  0x22   : > { %s131_s18 = sshll.u32 %s130_s17, 4  ;;  %s132_s18 = int_to_ptr.hbm [resolvable:$true] %s131_s18 }
  0x23   : > { %s1229_s20 = sshra.s32 %s132_s18, 4  ;;  %s1230_s20 = int_to_ptr.hbm [resolvable:$true] %s1229_s20 }
  0x24   : > { %s1231_s25 = scalar_lea.hbm %s1230_s20, 128  ;;  %p1237_p3 = scmp.lt.s32.totalorder %s1230_s20, %s2394_s2 }
  0x25   : > { %p1232_p13 = scmp.ne.s32.totalorder %s1230_s20, %s1231_s25  ;;  %p1238_p4 = scmp.lt.s32.totalorder %s1236_s30, %s1231_s25 }
  0x27   : > { %p1234_p1 = pnand %p1233_p0, %p1232_p13  ;;  %p1239_p6 = por %p1238_p4, %p1237_p3 }
  0x29   : > { %p1235_p2 = pneg %p1234_p1 }
  0x2b   : > { %p1240_p7 = pnand %p1239_p6, %p1235_p2 }
  0x2d   : > { %1243 = shalt.err (!%p1240_p7)
}
  0x2e   : > { %s1315_s29 = smov 128   ;;  %s1316_s7 = smov 8  }
  0x2f   : > { %1151 = dma.hbm_to_vmem [thread:$0]  (!%p1388_p9), %s132_s18, 2048, %s134_s12, %s118_s19, %s1315_s29, %s1315_s29, %s1316_s7  }
  0x30   : > { %145 = sbr.rel (%p1398_p12) target bundleno = 556 (0x22c), region = 24  ;;  %s147_s9 = sand.u32 (!%p1398_p12), 1, %s1295_s21  }
  0x31   : > { %s1137_s10 = sshll.u32 (!%p1398_p12), %s147_s9, 7  ;;  %s148_s11 = scalar_lea.sflag (!%p1398_p12), [#allocation6], %s147_s9 }
  0x32   : > { %s1418_s14 = scalar_lea.vmem (!%p1398_p12), [#allocation5], %s1137_s10 }
  0x35   : > { %1286 = dma.done.wait (%p1381_p5), %s148_s11, 2048  }
  0x36   : > { %1288 = vsyncadd (%p1381_p5), %s148_s11, 4294965248  ;;  %s1425_s15 = smul.u32 40, %s1303_s22  ;;  %v182_v0 = vlaneseq  ;;  %vm237_vm8 = vcmask 261120   ;;  %p175_p5 = scmp.lt.s32.totalorder %s1303_s22, 1 }
  0x38   : > { %s188_s6 = sld [smem:[#allocation3 + %s1425_s15]]  ;;  %s189_s12 = sadd.s32 1, %s1425_s15  ;;  %v1437_v1 = vshrl.u32 %v182_v0, 7  ;;  %v1448_v3 = vand.u32 127, %v182_v0 }
  0x39   : > { %s1429_s13 = sld [smem:[#allocation3 + %s189_s12]]  ;;  %s191_s16 = sadd.s32 2, %s1425_s15 }
  0x3a   : > { %s192_s28 = sld [smem:[#allocation3 + %s191_s16]]  ;;  %s193_s17 = sadd.s32 3, %s1425_s15  ;;  %v1443_v2 = vadd.s32 8, %v1437_v1 }
  0x3b   : > { %s1433_s18 = sld [smem:[#allocation3 + %s193_s17]]  ;;  %s195_s19 = sadd.s32 4, %s1425_s15 }
  0x3c   : > { %s196_s20 = sld [smem:[#allocation3 + %s195_s19]]  ;;  %s300_s25 = sadd.s32 5, %s1425_s15 }
  0x3d   : > { %s302_s26 = sadd.s32 6, %s1425_s15  ;;  %s1440_s27 = sld [smem:[#allocation3 + %s300_s25]] }
  0x3e   : > { %s1445_s30 = sld [smem:[#allocation3 + %s302_s26]]  ;;  %s306_s4 = sadd.s32 8, %s1425_s15  ;;  %v217_v4 = vstv %s188_s6 }
  0x3f   : > { %s1450_s5 = sld [smem:[#allocation3 + %s306_s4]]  ;;  %s308_s29 = sadd.s32 9, %s1425_s15  ;;  %v209_v6 = vstv %s1429_s13  ;;  %vm1464_vm0 = vcmp.ge.s32.totalorder %v1448_v3, %v217_v4 }
  0x40   : > { %s1453_s7 = sld [smem:[#allocation3 + %s308_s29]]  ;;  %v221_v8 = vstv %s192_s28  ;;  %s304_s10 = sadd.s32 7, %s1425_s15 }
  0x41   : > { %v212_v7 = vstv %s1433_s18  ;;  %vm1470_vm3 = vcmp.lt.s32.totalorder %v1448_v3, %v221_v8  ;;  %s1474_s11 = sld [smem:[#allocation3 + %s304_s10]]  ;;  %s413_s6 = sadd.s32 14, %s1425_s15 }
  0x42   : > { %s1456_s9 = scalar_lea.vmem %s1418_s14, %s196_s20 [#allocation5]  ;;  %v206_v5 = vstv %s196_s20  ;;  %s407_s12 = sadd.s32 11, %s1425_s15 }
  0x43   : > { %v207_v9 = vadd.s32 %v206_v5, %v1437_v1  ;;  %v208_v10 = vadd.s32 %v206_v5, %v1443_v2  ;;  %v200_v12 = vld [vmem:[%s1456_s9 + $0x20] sm:$0xff]  ;;  %v330_v26 = vstv %s1440_s27  ;;  %v201_v30 = vld [vmem:[%s1456_s9 + $0x28] sm:$0xff]  ;;  %s411_s13 = sadd.s32 13, %s1425_s15  ;;  %s1539_s16 = sld [smem:[#allocation3 + %s413_s6]] }
  0x44   : > { %v198_v14 = vld [vmem:[%s1456_s9] sm:$0xff]  ;;  %v322_v21 = vstv %s1445_s30  ;;  %v199_v31 = vld [vmem:[%s1456_s9 + $0x8] sm:$0xff]  ;;  %vm1534_vm15 = vcmp.ge.s32.totalorder %v1448_v3, %v330_v26  ;;  %s1553_s28 = sld [smem:[#allocation3 + %s407_s12]]  ;;  %s405_s17 = sadd.s32 10, %s1425_s15 }
  0x45   : > { %vm210_vm1 = vcmp.ge.s32.totalorder %v207_v9, %v209_v6  ;;  %vm213_vm2 = vcmp.lt.s32.totalorder %v207_v9, %v212_v7  ;;  %v202_v15 = vld [vmem:[%s1456_s9 + $0x40] sm:$0xff]  ;;  %vm1478_vm5 = vcmp.ge.s32.totalorder %v208_v10, %v209_v6  ;;  %vm1482_vm6 = vcmp.lt.s32.totalorder %v208_v10, %v212_v7  ;;  %v203_v33 = vld [vmem:[%s1456_s9 + $0x48] sm:$0xff]  ;;  %s1556_s18 = sld [smem:[#allocation3 + %s411_s13]]  ;;  %s409_s25 = sadd.s32 12, %s1425_s15 }
  0x46   : > { %vm215_vm4 = vmand %vm210_vm1, %vm213_vm2  ;;  %v319_v18 = vstv %s1453_s7  ;;  %v325_v22 = vstv %s1450_s5  ;;  %s1562_s19 = scalar_lea.vmem %s1418_s14, %s1453_s7 [#allocation5]  ;;  %v205_v48 = vld [vmem:[%s1456_s9 + $0x68] sm:$0xff]  ;;  %v204_v49 = vld [vmem:[%s1456_s9 + $0x60] sm:$0xff]  ;;  %s1582_s20 = sld [smem:[#allocation3 + %s405_s17]] }
  0x47   : > { %vm219_vm7 = vmand %vm215_vm4, %vm1464_vm0  ;;  %v320_v20 = vadd.s32 %v319_v18, %v1437_v1  ;;  %v334_v39 = vstv %s1474_s11  ;;  %v321_v40 = vadd.s32 %v319_v18, %v1443_v2  ;;  %v313_v50 = vld [vmem:[%s1562_s19 + $0x20] sm:$0xff]  ;;  %s1601_s26 = sld [smem:[#allocation3 + %s409_s25]]  ;;  %v312_v62 = vld [vmem:[%s1562_s19 + $0x8] sm:$0xff]  ;;  %s510_s27 = sadd.s32 15, %s1425_s15 }
  0x48   : > { %vm1491_vm9 = vmand %vm219_vm7, %vm1470_vm3  ;;  %vm1567_vm2 = vcmp.lt.s32.totalorder %v1448_v3, %v334_v39  ;;  %v311_v0 = vld [vmem:[%s1562_s19] sm:$0xff]  ;;  %v316_v7 = vld [vmem:[%s1562_s19 + $0x48] sm:$0xff]  ;;  %s512_s30 = sadd.s32 16, %s1425_s15  ;;  %s1649_s4 = sld [smem:[#allocation3 + %s510_s27]] }
  0x49   : > { %v231_v23 = vsel %vm1491_vm9, %v200_v12, -inf  ;;  %v229_v24 = vsel %vm1491_vm9, %v198_v14, -inf  ;;  %v233_v25 = vsel %vm1491_vm9, %v202_v15, -inf  ;;  %vm216_vm10 = vmand %vm1478_vm5, %vm1482_vm6  ;;  %vm1524_vm13 = vcmp.ge.s32.totalorder %v320_v20, %v322_v21  ;;  %s518_s5 = sadd.s32 19, %s1425_s15  ;;  %s1656_s29 = scalar_lea.vmem %s1418_s14, %s1539_s16 [#allocation5]  ;;  %v315_v18 = vld [vmem:[%s1562_s19 + $0x40] sm:$0xff]  ;;  %v314_v19 = vld [vmem:[%s1562_s19 + $0x28] sm:$0xff] }
  0x4a   : > { %v244_v27 = vsel %vm237_vm8, %v231_v23, -inf  ;;  %v238_v28 = vsel %vm237_vm8, %v229_v24, -inf  ;;  %v250_v29 = vsel %vm237_vm8, %v233_v25, -inf  ;;  %vm220_vm11 = vmand %vm216_vm10, %vm1464_vm0  ;;  %vm1528_vm14 = vcmp.lt.s32.totalorder %v320_v20, %v325_v22  ;;  %s516_s7 = sadd.s32 18, %s1425_s15  ;;  %s1668_s9 = sld [smem:[#allocation3 + %s512_s30]]  ;;  %v418_v20 = vld [vmem:[%s1656_s29 + $0x20] sm:$0xff] }
  0x4b   : > { %245 = vmax.xlane.f32.xlu1 %v244_v27  ;;  %239 = vmax.xlane.f32.xlu0 %v238_v28  ;;  %vm1519_vm12 = vmand %vm220_vm11, %vm1470_vm3  ;;  %vm1572_vm3 = vcmp.ge.s32.totalorder %v321_v40, %v322_v21  ;;  %vm1576_vm4 = vcmp.lt.s32.totalorder %v321_v40, %v325_v22  ;;  %v424_v52 = vstv %s1539_s16  ;;  %v235_v54 = vsel %vm1491_vm9, %v204_v49, -inf  ;;  %s514_s10 = sadd.s32 17, %s1425_s15  ;;  %s1673_s11 = sld [smem:[#allocation3 + %s518_s5]]  ;;  %v318_v27 = vld [vmem:[%s1562_s19 + $0x68] sm:$0xff]  ;;  %v317_v28 = vld [vmem:[%s1562_s19 + $0x60] sm:$0xff] }
  0x4c   : > { %251 = vmax.xlane.f32.xlu2 %v250_v29  ;;  %v232_v37 = vsel %vm1519_vm12, %v201_v30, -inf  ;;  %v230_v38 = vsel %vm1519_vm12, %v199_v31, -inf  ;;  %vm328_vm0 = vmand %vm1524_vm13, %vm1528_vm14  ;;  %v234_v41 = vsel %vm1519_vm12, %v203_v33, -inf  ;;  %v236_v53 = vsel %vm1519_vm12, %v205_v48, -inf  ;;  %s1682_s6 = sld [smem:[#allocation3 + %s516_s7]]  ;;  %v421_v31 = vld [vmem:[%s1656_s29 + $0x48] sm:$0xff] }
  0x4d   : > { %v247_v42 = vsel %vm237_vm8, %v232_v37, -inf  ;;  %v241_v43 = vsel %vm237_vm8, %v230_v38, -inf  ;;  %vm332_vm1 = vmand %vm328_vm0, %vm1534_vm15  ;;  %v253_v45 = vsel %vm237_vm8, %v234_v41, -inf  ;;  %v425_v56 = vadd.s32 %v424_v52, %v1437_v1  ;;  %s1688_s12 = sld [smem:[#allocation3 + %s514_s10]]  ;;  %s623_s16 = sadd.s32 24, %s1425_s15  ;;  %v417_v47 = vld [vmem:[%s1656_s29 + $0x8] sm:$0xff] }
  0x4e   : > { %vm1588_vm5 = vmand %vm332_vm1, %vm1567_vm2  ;;  %v427_v57 = vstv %s1553_s28  ;;  %v430_v58 = vstv %s1556_s18  ;;  %v259_v59 = vsel %vm237_vm8, %v236_v53, -inf  ;;  %v256_v60 = vsel %vm237_vm8, %v235_v54, -inf  ;;  %s617_s28 = sadd.s32 21, %s1425_s15  ;;  %v416_v48 = vld [vmem:[%s1656_s29] sm:$0xff]  ;;  %s621_s17 = sadd.s32 23, %s1425_s15 }
  0x4f   : > { %vm329_vm6 = vmand %vm1572_vm3, %vm1576_vm4  ;;  %v344_v55 = vsel %vm1588_vm5, %v313_v50, -inf  ;;  %vm1621_vm10 = vcmp.ge.s32.totalorder %v425_v56, %v427_v57  ;;  %vm1625_vm11 = vcmp.lt.s32.totalorder %v425_v56, %v430_v58  ;;  %v435_v6 = vstv %s1582_s20  ;;  %s615_s18 = sadd.s32 20, %s1425_s15  ;;  %s1751_s19 = sld [smem:[#allocation3 + %s623_s16]] }
  0x50   : > { %vm333_vm7 = vmand %vm329_vm6, %vm1534_vm15  ;;  %v356_v61 = vsel %vm237_vm8, %v344_v55, -inf  ;;  %v342_v9 = vsel %vm1588_vm5, %v311_v0, -inf  ;;  %vm1641_vm13 = vcmp.ge.s32.totalorder %v1448_v3, %v435_v6  ;;  %v439_v11 = vstv %s1601_s26  ;;  %s1761_s20 = sld [smem:[#allocation3 + %s617_s28]]  ;;  %s619_s25 = sadd.s32 22, %s1425_s15 }
  0x51   : > { %vm1616_vm9 = vmand %vm333_vm7, %vm1567_vm2  ;;  %v350_v14 = vsel %vm237_vm8, %v342_v9, -inf  ;;  %vm1661_vm15 = vcmp.lt.s32.totalorder %v1448_v3, %v439_v11  ;;  %v426_v16 = vadd.s32 %v424_v52, %v1443_v2  ;;  %v346_v22 = vsel %vm1588_vm5, %v315_v18, -inf  ;;  %s1727_s13 = scalar_lea.vmem %s1418_s14, %s1673_s11 [#allocation5]  ;;  %s1768_s26 = sld [smem:[#allocation3 + %s621_s17]] }
  0x52   : > { %v343_v8 = vsel %vm1616_vm9, %v312_v62, -inf  ;;  %vm433_vm12 = vmand %vm1621_vm10, %vm1625_vm11  ;;  %v347_v12 = vsel %vm1616_vm9, %v316_v7, -inf  ;;  %v345_v23 = vsel %vm1616_vm9, %v314_v19, -inf  ;;  %v362_v25 = vsel %vm237_vm8, %v346_v22, -inf  ;;  %v523_v49 = vld [vmem:[%s1727_s13 + $0x20] sm:$0xff]  ;;  %s616_s27 = sld [smem:[#allocation3 + %s615_s18]] }
  0x53   : > { %248 = vmax.xlane.f32.xlu1 %v247_v42  ;;  %242 = vmax.xlane.f32.xlu0 %v241_v43  ;;  %v353_v13 = vsel %vm237_vm8, %v343_v8, -inf  ;;  %vm437_vm14 = vmand %vm433_vm12, %vm1641_vm13  ;;  %v365_v17 = vsel %vm237_vm8, %v347_v12, -inf  ;;  %vm429_vm1 = vcmp.ge.s32.totalorder %v426_v16, %v427_v57  ;;  %vm432_vm2 = vcmp.lt.s32.totalorder %v426_v16, %v430_v58  ;;  %s620_s30 = sld [smem:[#allocation3 + %s619_s25]]  ;;  %s728_s5 = sadd.s32 29, %s1425_s15  ;;  %v423_v16 = vld [vmem:[%s1656_s29 + $0x68] sm:$0xff] }
  0x54   : > { %254 = vmax.xlane.f32.xlu2 %v253_v45  ;;  %vm1678_vm0 = vmand %vm437_vm14, %vm1661_vm15  ;;  %v359_v26 = vsel %vm237_vm8, %v345_v23, -inf  ;;  %v529_v30 = vstv %s1673_s11  ;;  %v532_v33 = vstv %s1668_s9  ;;  %v535_v34 = vstv %s1682_s6  ;;  %s722_s7 = sadd.s32 26, %s1425_s15  ;;  %s726_s9 = sadd.s32 28, %s1425_s15 }
  0x55   : > { %v449_v24 = vsel %vm1678_vm0, %v418_v20, -inf  ;;  %vm434_vm3 = vmand %vm429_vm1, %vm432_vm2  ;;  %v530_v32 = vadd.s32 %v529_v30, %v1437_v1  ;;  %v540_v35 = vstv %s1649_s4  ;;  %v349_v36 = vsel %vm1616_vm9, %v318_v27, -inf  ;;  %s1809_s4 = scalar_lea.vmem %s1418_s14, %s1751_s19 [#allocation5]  ;;  %s720_s10 = sadd.s32 25, %s1425_s15  ;;  %v522_v27 = vld [vmem:[%s1727_s13 + $0x8] sm:$0xff] }
  0x56   : > { %v461_v29 = vsel %vm237_vm8, %v449_v24, -inf  ;;  %vm438_vm4 = vmand %vm434_vm3, %vm1641_vm13  ;;  %v348_v37 = vsel %vm1588_vm5, %v317_v28, -inf  ;;  %vm1716_vm11 = vcmp.ge.s32.totalorder %v1448_v3, %v540_v35  ;;  %v544_v40 = vstv %s1688_s12  ;;  %v628_v18 = vld [vmem:[%s1809_s4 + $0x20] sm:$0xff]  ;;  %s1833_s11 = sld [smem:[#allocation3 + %s728_s5]]  ;;  %s833_s17 = sadd.s32 34, %s1425_s15  ;;  %v627_v50 = vld [vmem:[%s1809_s4 + $0x8] sm:$0xff] }
  0x57   : > { %vm1711_vm6 = vmand %vm438_vm4, %vm1661_vm15  ;;  %vm533_vm7 = vcmp.ge.s32.totalorder %v530_v32, %v532_v33  ;;  %vm536_vm10 = vcmp.lt.s32.totalorder %v530_v32, %v535_v34  ;;  %v371_v42 = vsel %vm237_vm8, %v349_v36, -inf  ;;  %v368_v43 = vsel %vm237_vm8, %v348_v37, -inf  ;;  %s1835_s6 = sld [smem:[#allocation3 + %s722_s7]]  ;;  %s827_s18 = sadd.s32 31, %s1425_s15  ;;  %v521_v28 = vld [vmem:[%s1727_s13] sm:$0xff] }
  0x58   : > { %v452_v41 = vsel %vm1711_vm6, %v421_v31, -inf  ;;  %vm538_vm5 = vmand %vm533_vm7, %vm536_vm10  ;;  %vm1732_vm12 = vcmp.lt.s32.totalorder %v1448_v3, %v544_v40  ;;  %v531_v45 = vadd.s32 %v529_v30, %v1443_v2  ;;  %v448_v53 = vsel %vm1711_vm6, %v417_v47, -inf  ;;  %s1842_s12 = sld [smem:[#allocation3 + %s726_s9]]  ;;  %v631_v30 = vld [vmem:[%s1809_s4 + $0x48] sm:$0xff]  ;;  %s2508_s22 = smov (!%p175_p5, %s1303_s22), 1 }
  0x59   : > { %vm542_vm9 = vmand %vm538_vm5, %vm1716_vm11  ;;  %v470_v46 = vsel %vm237_vm8, %v452_v41, -inf  ;;  %v447_v54 = vsel %vm1678_vm0, %v416_v48, -inf  ;;  %v458_v56 = vsel %vm237_vm8, %v448_v53, -inf  ;;  %v634_v62 = vstv %s1751_s19  ;;  %s1846_s16 = sld [smem:[#allocation3 + %s720_s10]]  ;;  %s831_s19 = sadd.s32 33, %s1425_s15 }
  0x5a   : > { %vm1746_vm13 = vmand %vm542_vm9, %vm1732_vm12  ;;  %vm1753_vm14 = vcmp.ge.s32.totalorder %v531_v45, %v532_v33  ;;  %vm1757_vm15 = vcmp.lt.s32.totalorder %v531_v45, %v535_v34  ;;  %v455_v57 = vsel %vm237_vm8, %v447_v54, -inf  ;;  %v635_v63 = vadd.s32 %v634_v62, %v1437_v1  ;;  %s1869_s25 = sld [smem:[#allocation3 + %s833_s17]]  ;;  %v525_v45 = vld [vmem:[%s1727_s13 + $0x40] sm:$0xff]  ;;  %s930_s17 = sadd.s32 35, %s1425_s15 }
  0x5b   : > { %260 = vmax.xlane.f32.xlu1 %v259_v59  ;;  %257 = vmax.xlane.f32.xlu0 %v256_v60  ;;  %v554_v55 = vsel %vm1746_vm13, %v523_v49, -inf  ;;  %vm539_vm1 = vmand %vm1753_vm14, %vm1757_vm15  ;;  %v420_v59 = vld [vmem:[%s1656_s29 + $0x40] sm:$0xff]  ;;  %v419_v60 = vld [vmem:[%s1656_s29 + $0x28] sm:$0xff]  ;;  %v637_v6 = vstv %s1761_s20  ;;  %v640_v7 = vstv %s1768_s26  ;;  %v636_v20 = vadd.s32 %v634_v62, %v1443_v2  ;;  %s825_s20 = sadd.s32 30, %s1425_s15  ;;  %s1874_s26 = sld [smem:[#allocation3 + %s827_s18]] }
  0x5c   : > { %357 = vmax.xlane.f32.xlu2 %v356_v61  ;;  %v566_v58 = vsel %vm237_vm8, %v554_v55, -inf  ;;  %vm543_vm2 = vmand %vm539_vm1, %vm1716_vm11  ;;  %v526_v61 = vld [vmem:[%s1727_s13 + $0x48] sm:$0xff]  ;;  %v451_v0 = vsel %vm1678_vm0, %v420_v59, -inf  ;;  %v450_v4 = vsel %vm1711_vm6, %v419_v60, -inf  ;;  %vm638_vm4 = vcmp.ge.s32.totalorder %v635_v63, %v637_v6  ;;  %s826_s5 = sld [smem:[#allocation3 + %s825_s20]]  ;;  %s1904_s9 = scalar_lea.vmem %s1418_s14, %s1833_s11 [#allocation5] }
  0x5d   : > { %vm1792_vm3 = vmand %vm543_vm2, %vm1732_vm12  ;;  %vm641_vm7 = vcmp.lt.s32.totalorder %v635_v63, %v640_v7  ;;  %v645_v9 = vstv %s616_s27  ;;  %v649_v11 = vstv %s620_s30  ;;  %v467_v12 = vsel %vm237_vm8, %v451_v0, -inf  ;;  %s829_s27 = sadd.s32 32, %s1425_s15  ;;  %s1883_s30 = sld [smem:[#allocation3 + %s831_s19]]  ;;  %v732_v47 = vld [vmem:[%s1904_s9 + $0x8] sm:$0xff]  ;;  %v737_v48 = vld [vmem:[%s1904_s9 + $0x60] sm:$0xff] }
  0x5e   : > { %v557_v8 = vsel %vm1792_vm3, %v526_v61, -inf  ;;  %vm643_vm10 = vmand %vm638_vm4, %vm641_vm7  ;;  %vm1801_vm11 = vcmp.ge.s32.totalorder %v1448_v3, %v645_v9  ;;  %vm1814_vm9 = vcmp.lt.s32.totalorder %v1448_v3, %v649_v11  ;;  %v454_v22 = vsel %vm1711_vm6, %v423_v16, -inf  ;;  %s1898_s7 = sld [smem:[#allocation3 + %s829_s27]] }
  0x5f   : > { %vm647_vm5 = vmand %vm643_vm10, %vm1801_vm11  ;;  %v575_v15 = vsel %vm237_vm8, %v557_v8, -inf  ;;  %vm639_vm14 = vcmp.ge.s32.totalorder %v636_v20, %v637_v6  ;;  %vm642_vm15 = vcmp.lt.s32.totalorder %v636_v20, %v640_v7  ;;  %v476_v21 = vsel %vm237_vm8, %v454_v22, -inf  ;;  %v528_v6 = vld [vmem:[%s1727_s13 + $0x68] sm:$0xff]  ;;  %v527_v7 = vld [vmem:[%s1727_s13 + $0x60] sm:$0xff] }
  0x60   : > { %vm1827_vm12 = vmand %vm647_vm5, %vm1814_vm9  ;;  %v739_v31 = vstv %s1833_s11  ;;  %v553_v33 = vsel %vm1792_vm3, %v522_v27, -inf  ;;  %v552_v34 = vsel %vm1746_vm13, %v521_v28, -inf  ;;  %v742_v35 = vstv %s1835_s6  ;;  %s1951_s10 = scalar_lea.vmem %s1418_s14, %s1869_s25 [#allocation5] }
  0x61   : > { %v659_v24 = vsel %vm1827_vm12, %v628_v18, -inf  ;;  %vm644_vm1 = vmand %vm639_vm14, %vm642_vm15  ;;  %v741_v32 = vadd.s32 %v739_v31, %v1443_v2  ;;  %v745_v36 = vstv %s1842_s12  ;;  %v750_v38 = vstv %s1846_s16  ;;  %s938_s16 = sadd.s32 39, %s1425_s15  ;;  %v836_v8 = vld [vmem:[%s1951_s10] sm:$0xff] }
  0x62   : > { %vm1893_vm10 = vcmp.ge.s32.totalorder %v1448_v3, %v750_v38  ;;  %v563_v41 = vsel %vm237_vm8, %v553_v33, -inf  ;;  %v844_v49 = vstv %s1869_s25  ;;  %v556_v52 = vsel %vm1746_vm13, %v525_v45, -inf  ;;  %s1982_s19 = sld [smem:[#allocation3 + %s938_s16]] }
  0x63   : > { %354 = vmax.xlane.f32.xlu1 %v353_v13  ;;  %351 = vmax.xlane.f32.xlu0 %v350_v14  ;;  %v464_v13 = vsel %vm237_vm8, %v450_v4, -inf  ;;  %vm744_vm2 = vcmp.ge.s32.totalorder %v741_v32, %v742_v35  ;;  %vm747_vm4 = vcmp.lt.s32.totalorder %v741_v32, %v745_v36  ;;  %v845_v51 = vadd.s32 %v844_v49, %v1437_v1  ;;  %s931_s25 = sld [smem:[#allocation3 + %s930_s17]] }
  0x64   : > { %366 = vmax.xlane.f32.xlu2 %v365_v17  ;;  %v422_v17 = vld [vmem:[%s1656_s29 + $0x60] sm:$0xff]  ;;  %s724_s29 = sadd.s32 27, %s1425_s15  ;;  %vm749_vm7 = vmand %vm744_vm2, %vm747_vm4  ;;  %v847_v54 = vstv %s1874_s26  ;;  %v850_v55 = vstv %s1883_s30  ;;  %v855_v59 = vstv %s826_s5  ;;  %v572_v62 = vsel %vm237_vm8, %v556_v52, -inf }
  0x65   : > { %v453_v23 = vsel %vm1678_vm0, %v422_v17, -inf  ;;  %s1848_s28 = sld [smem:[#allocation3 + %s724_s29]]  ;;  %vm648_vm0 = vmand %vm644_vm1, %vm1801_vm11  ;;  %vm1933_vm14 = vcmp.ge.s32.totalorder %v845_v51, %v847_v54  ;;  %vm1937_vm15 = vcmp.lt.s32.totalorder %v845_v51, %v850_v55  ;;  %vm1942_vm1 = vcmp.ge.s32.totalorder %v1448_v3, %v855_v59  ;;  %s932_s29 = sadd.s32 36, %s1425_s15  ;;  %v839_v17 = vld [vmem:[%s1951_s10 + $0x28] sm:$0xff]  ;;  %v731_v51 = vld [vmem:[%s1904_s9] sm:$0xff] }
  0x66   : > { %vm1862_vm6 = vmand %vm648_vm0, %vm1814_vm9  ;;  %v859_v61 = vstv %s1898_s7  ;;  %s1978_s18 = sld [smem:[#allocation3 + %s932_s29]]  ;;  %v846_v10 = vadd.s32 %v844_v49, %v1443_v2  ;;  %v559_v11 = vsel %vm1792_vm3, %v528_v6, -inf }
  0x67   : > { %v662_v37 = vsel %vm1862_vm6, %v631_v30, -inf  ;;  %vm753_vm11 = vmand %vm749_vm7, %vm1893_vm10  ;;  %vm1954_vm0 = vcmp.lt.s32.totalorder %v1448_v3, %v859_v61  ;;  %v581_v14 = vsel %vm237_vm8, %v559_v11, -inf  ;;  %v658_v20 = vsel %vm1862_vm6, %v627_v50, -inf }
  0x68   : > { %v680_v44 = vsel %vm237_vm8, %v662_v37, -inf  ;;  %vm853_vm2 = vmand %vm1933_vm14, %vm1937_vm15  ;;  %vm852_vm14 = vcmp.lt.s32.totalorder %v846_v10, %v850_v55  ;;  %s2028_s11 = scalar_lea.vmem %s1418_s14, %s1982_s19 [#allocation5]  ;;  %s1138_s14 = sshll.u32 %s2508_s22, 3 }
  0x69   : > { %vm857_vm4 = vmand %vm853_vm2, %vm1942_vm1  ;;  %v960_v28 = vstv %s931_s25  ;;  %s2291_s12 = scalar_lea.vmem %s2395_s3, %s1138_s14 }
  0x6a   : > { %vm1973_vm7 = vmand %vm857_vm4, %vm1954_vm0  ;;  %vm2020_vm2 = vcmp.ge.s32.totalorder %v1448_v3, %v960_v28 }
  0x6b   : > { %363 = vmax.xlane.f32.xlu1 %v362_v25  ;;  %360 = vmax.xlane.f32.xlu0 %v359_v26  ;;  %v473_v25 = vsel %vm237_vm8, %v453_v23, -inf  ;;  %v671_v26 = vsel %vm237_vm8, %v659_v24, -inf  ;;  %v754_v40 = vstv %s1848_s28  ;;  %s936_s28 = sadd.s32 38, %s1425_s15  ;;  %v949_v23 = vstv %s1982_s19 }
  0x6c   : > { %462 = vmax.xlane.f32.xlu2 %v461_v29  ;;  %vm1909_vm5 = vcmp.lt.s32.totalorder %v1448_v3, %v754_v40  ;;  %s1988_s20 = sld [smem:[#allocation3 + %s936_s28]]  ;;  %v740_v24 = vadd.s32 %v739_v31, %v1437_v1  ;;  %v668_v31 = vsel %vm237_vm8, %v658_v20, -inf  ;;  %v630_v40 = vld [vmem:[%s1809_s4 + $0x40] sm:$0xff]  ;;  %v951_v60 = vadd.s32 %v949_v23, %v1443_v2 }
  0x6d   : > { %vm1919_vm9 = vmand %vm753_vm11, %vm1909_vm5  ;;  %vm849_vm11 = vcmp.ge.s32.totalorder %v846_v10, %v847_v54  ;;  %v2108_v2 = vadd.s32 4294967288, %v1448_v3 }
  0x6e   : > { %vm854_vm15 = vmand %vm849_vm11, %vm852_vm14  ;;  %vm2037_vm14 = vcmp.ge.s32.totalorder %v740_v24, %v742_v35  ;;  %v943_v35 = vld [vmem:[%s2028_s11 + $0x20] sm:$0xff] }
  0x73   : > { %372 = vmax.xlane.f32.xlu1 %v371_v42  ;;  %369 = vmax.xlane.f32.xlu0 %v368_v43  ;;  %v560_v42 = vsel %vm237_vm8, %v552_v34, -inf  ;;  %v734_v43 = vld [vmem:[%s1904_s9 + $0x28] sm:$0xff] }
  0x74   : > { %471 = vmax.xlane.f32.xlu2 %v470_v46  ;;  %v524_v46 = vld [vmem:[%s1727_s13 + $0x28] sm:$0xff]  ;;  %s934_s13 = sadd.s32 37, %s1425_s15 }
  0x75   : > { %v555_v53 = vsel %vm1792_vm3, %v524_v46, -inf  ;;  %s935_s15 = sld [smem:[#allocation3 + %s934_s13]] }
  0x76   : > { %v569_v63 = vsel %vm237_vm8, %v555_v53, -inf  ;;  %v632_v53 = vld [vmem:[%s1809_s4 + $0x60] sm:$0xff] }
  0x77   : > { %v663_v54 = vsel %vm1827_vm12, %v632_v53, -inf }
  0x7b   : > { %459 = vmax.xlane.f32.xlu1 %v458_v56  ;;  %456 = vmax.xlane.f32.xlu0 %v455_v57  ;;  %v763_v56 = vsel %vm1919_vm9, %v732_v47, -inf  ;;  %v964_v32 = vstv %s935_s15  ;;  %v733_v57 = vld [vmem:[%s1904_s9 + $0x20] sm:$0xff] }
  0x7c   : > { %567 = vmax.xlane.f32.xlu2 %v566_v58  ;;  %v773_v4 = vsel %vm237_vm8, %v763_v56, -inf  ;;  %vm2031_vm11 = vcmp.lt.s32.totalorder %v1448_v3, %v964_v32  ;;  %v683_v56 = vsel %vm237_vm8, %v663_v54, -inf  ;;  %v765_v58 = vsel %vm1919_vm9, %v734_v43, -inf  ;;  %v840_v43 = vld [vmem:[%s1951_s10 + $0x40] sm:$0xff] }
  0x83   : > { %468 = vmax.xlane.f32.xlu1 %v467_v12  ;;  %465 = vmax.xlane.f32.xlu0 %v464_v13  ;;  %v558_v12 = vsel %vm1746_vm13, %v527_v7, -inf  ;;  %v867_v13 = vsel %vm1973_vm7, %v836_v8, -inf  ;;  %vm858_vm13 = vmand %vm854_vm15, %vm1942_vm1  ;;  %vm2043_vm15 = vcmp.lt.s32.totalorder %v740_v24, %v745_v36  ;;  %v661_v36 = vsel %vm1827_vm12, %v630_v40, -inf  ;;  %v838_v7 = vld [vmem:[%s1951_s10 + $0x20] sm:$0xff]  ;;  %v837_v8 = vld [vmem:[%s1951_s10 + $0x8] sm:$0xff] }
  0x84   : > { %576 = vmax.xlane.f32.xlu2 %v575_v15  ;;  %v578_v5 = vsel %vm237_vm8, %v558_v12, -inf  ;;  %v626_v15 = vld [vmem:[%s1809_s4] sm:$0xff]  ;;  %v875_v16 = vsel %vm237_vm8, %v867_v13, -inf  ;;  %vm2002_vm3 = vmand %vm858_vm13, %vm1954_vm0  ;;  %v677_v46 = vsel %vm237_vm8, %v661_v36, -inf  ;;  %v869_v10 = vsel %vm1973_vm7, %v838_v7, -inf  ;;  %v942_v24 = vld [vmem:[%s2028_s11 + $0x8] sm:$0xff] }
  0x85   : > { %v657_v22 = vsel %vm1827_vm12, %v626_v15, -inf  ;;  %v870_v27 = vsel %vm2002_vm3, %v839_v17, -inf  ;;  %v868_v11 = vsel %vm2002_vm3, %v837_v8, -inf  ;;  %v881_v15 = vsel %vm237_vm8, %v869_v10, -inf  ;;  %v633_v10 = vld [vmem:[%s1809_s4 + $0x68] sm:$0xff] }
  0x86   : > { %v884_v38 = vsel %vm237_vm8, %v870_v27, -inf }
  0x8b   : > { %477 = vmax.xlane.f32.xlu1 %v476_v21  ;;  %474 = vmax.xlane.f32.xlu0 %v473_v25  ;;  %v950_v21 = vadd.s32 %v949_v23, %v1437_v1  ;;  %v952_v25 = vstv %s1978_s18  ;;  %v665_v1 = vsel %vm237_vm8, %v657_v22, -inf }
  0x8c   : > { %672 = vmax.xlane.f32.xlu2 %v671_v26  ;;  %v955_v26 = vstv %s1988_s20  ;;  %vm2097_vm12 = vcmp.ge.s32.totalorder %v951_v60, %v952_v25 }
  0x8d   : > { %vm953_vm1 = vcmp.ge.s32.totalorder %v950_v21, %v952_v25  ;;  %vm956_vm0 = vcmp.lt.s32.totalorder %v950_v21, %v955_v26  ;;  %v941_v25 = vld [vmem:[%s2028_s11] sm:$0xff] }
  0x8e   : > { %vm958_vm4 = vmand %vm953_vm1, %vm956_vm0 }
  0x8f   : > { %vm962_vm13 = vmand %vm958_vm4, %vm2020_vm2 }
  0x90   : > { %vm2055_vm1 = vmand %vm962_vm13, %vm2031_vm11  ;;  %vm273_vm13 = vcmask 130112  }
  0x91   : > { %vm748_vm0 = vmand %vm2037_vm14, %vm2043_vm15  ;;  %v974_v45 = vsel %vm2055_vm1, %v943_v35, -inf  ;;  %v972_v30 = vsel %vm2055_vm1, %v941_v25, -inf }
  0x92   : > { %vm752_vm4 = vmand %vm748_vm0, %vm1893_vm10  ;;  %v986_v49 = vsel %vm237_vm8, %v974_v45, -inf  ;;  %vm2101_vm10 = vcmp.lt.s32.totalorder %v951_v60, %v955_v26  ;;  %v980_v40 = vsel %vm237_vm8, %v972_v30, -inf  ;;  %v944_v45 = vld [vmem:[%s2028_s11 + $0x28] sm:$0xff] }
  0x93   : > { %564 = vmax.xlane.f32.xlu1 %v563_v41  ;;  %561 = vmax.xlane.f32.xlu0 %v560_v42  ;;  %v629_v41 = vld [vmem:[%s1809_s4 + $0x28] sm:$0xff]  ;;  %vm2077_vm14 = vmand %vm752_vm4, %vm1909_vm5  ;;  %vm288_vm4 = vcmask 1043459  }
  0x94   : > { %681 = vmax.xlane.f32.xlu2 %v680_v44  ;;  %v660_v44 = vsel %vm1862_vm6, %v629_v41, -inf  ;;  %v762_v39 = vsel %vm2077_vm14, %v731_v51, -inf  ;;  %v764_v59 = vsel %vm2077_vm14, %v733_v57, -inf  ;;  %vm959_vm5 = vmand %vm2097_vm12, %vm2101_vm10  ;;  %vm291_vm12 = vcmask 125952  }
  0x95   : > { %v674_v47 = vsel %vm237_vm8, %v660_v44, -inf  ;;  %v770_v55 = vsel %vm237_vm8, %v762_v39, -inf  ;;  %v776_v0 = vsel %vm237_vm8, %v764_v59, -inf  ;;  %vm963_vm15 = vmand %vm959_vm5, %vm2020_vm2  ;;  %vm284_vm2 = vcmask 1041409   ;;  %v735_v44 = vld [vmem:[%s1904_s9 + $0x40] sm:$0xff] }
  0x96   : > { %vm2131_vm0 = vmand %vm963_vm15, %vm2031_vm11  ;;  %vm286_vm11 = vcmask 1042434   ;;  %v871_v59 = vsel %vm1973_vm7, %v840_v43, -inf }
  0x97   : > { %v973_v28 = vsel %vm2131_vm0, %v942_v24, -inf  ;;  %v975_v51 = vsel %vm2131_vm0, %v944_v45, -inf }
  0x9b   : > { %573 = vmax.xlane.f32.xlu1 %v572_v62  ;;  %570 = vmax.xlane.f32.xlu0 %v569_v63  ;;  %v779_v63 = vsel %vm237_vm8, %v765_v58, -inf }
  0x9c   : > { %774 = vmax.xlane.f32.xlu2 %v773_v4 }
  0xa3   : > { %582 = vmax.xlane.f32.xlu1 %v581_v14  ;;  %579 = vmax.xlane.f32.xlu0 %v578_v5 }
  0xa4   : > { %876 = vmax.xlane.f32.xlu2 %v875_v16  ;;  %v878_v16 = vsel %vm237_vm8, %v868_v11, -inf }
  0xab   : > { %669 = vmax.xlane.f32.xlu1 %v668_v31  ;;  %666 = vmax.xlane.f32.xlu0 %v665_v1 }
  0xac   : > { %885 = vmax.xlane.f32.xlu2 %v884_v38  ;;  %v983_v38 = vsel %vm237_vm8, %v973_v28, -inf }
  0xb3   : > { %678 = vmax.xlane.f32.xlu1 %v677_v46  ;;  %675 = vmax.xlane.f32.xlu0 %v674_v47 }
  0xb4   : > { %987 = vmax.xlane.f32.xlu2 %v986_v49  ;;  %v766_v49 = vsel %vm2077_vm14, %v735_v44, -inf }
  0xb5   : > { %v782_v54 = vsel %vm237_vm8, %v766_v49, -inf }
  0xbb   : > { %771 = vmax.xlane.f32.xlu1 %v770_v55  ;;  %684 = vmax.xlane.f32.xlu0 %v683_v56  ;;  %v989_v55 = vsel %vm237_vm8, %v975_v51, -inf  ;;  %v841_v56 = vld [vmem:[%s1951_s10 + $0x48] sm:$0xff] }
  0xbc   : > { %v872_v58 = vsel %vm2002_vm3, %v841_v56, -inf }
  0xbe   : > { %v246_v19 = vpop.xlane.xlu1 %245  ;;  %v240_v61 = vpop.xlane.xlu0 %239 }
  0xbf   : > { %v252_v62 = vpop.xlane.xlu2 %251  ;;  %v275_v17 = vperm.slane %v246_v19, %v1448_v3  ;;  %v270_v20 = vperm.slane %v240_v61, %v1448_v3 }
  0xc0   : > { %v278_v22 = vperm.slane %v252_v62, %v1448_v3 }
  0xc3   : > { %780 = vmax.xlane.f32.xlu1 %v779_v63  ;;  %777 = vmax.xlane.f32.xlu0 %v776_v0  ;;  %v890_v63 = vsel %vm237_vm8, %v872_v58, -inf  ;;  %v887_v0 = vsel %vm237_vm8, %v871_v59, -inf  ;;  %v738_v58 = vld [vmem:[%s1904_s9 + $0x68] sm:$0xff] }
  0xc6   : > { %v249_v12 = vpop.xlane.xlu1 %248  ;;  %v243_v13 = vpop.xlane.xlu0 %242 }
  0xc7   : > { %v276_v14 = vperm.slane %v249_v12, %v2108_v2  ;;  %v272_v5 = vperm.slane %v243_v13, %v2108_v2  ;;  %v255_v50 = vpop.xlane.xlu2 %254  ;;  %v664_v13 = vsel %vm1862_vm6, %v633_v10, -inf }
  0xc8   : > { %v279_v23 = vperm.slane %v255_v50, %v2108_v2 }
  0xc9   : > { %v277_v26 = vsel %vm273_vm13, %v276_v14, %v275_v17  ;;  %v274_v27 = vsel %vm273_vm13, %v272_v5, %v270_v20 }
  0xca   : > { %v280_v32 = vsel %vm273_vm13, %v279_v23, %v278_v22  ;;  %v285_v33 = vsel %vm284_vm2, %v277_v26, %v274_v27  ;;  %v686_v22 = vsel %vm237_vm8, %v664_v13, -inf }
  0xcb   : > { %882 = vmax.xlane.f32.xlu1 %v881_v15  ;;  %879 = vmax.xlane.f32.xlu0 %v878_v16  ;;  %v287_v35 = vsel %vm286_vm11, %v280_v32, %v285_v33 }
  0xce   : > { %v261_v31 = vpop.xlane.xlu1 %260  ;;  %v258_v1 = vpop.xlane.xlu0 %257 }
  0xcf   : > { %v282_v34 = vperm.slane %v261_v31, %v2108_v2  ;;  %v281_v37 = vperm.slane %v258_v1, %v1448_v3  ;;  %v358_v47 = vpop.xlane.xlu2 %357 }
  0xd0   : > { %v385_v61 = vperm.slane %v358_v47, %v1448_v3 }
  0xd1   : > { %v283_v41 = vsel %vm273_vm13, %v282_v34, %v281_v37 }
  0xd2   : > { %v289_v36 = vsel %vm288_vm4, %v283_v41, %v287_v35  ;;  %v946_v41 = vld [vmem:[%s2028_s11 + $0x48] sm:$0xff] }
  0xd3   : > { %984 = vmax.xlane.f32.xlu1 %v983_v38  ;;  %v292_v46 = vsel %vm291_vm12, %v289_v36, -inf  ;;  %981 = vmax.xlane.f32.xlu0 %v980_v40  ;;  %v977_v36 = vsel %vm2131_vm0, %v946_v41, -inf  ;;  %v945_v41 = vld [vmem:[%s2028_s11 + $0x40] sm:$0xff] }
  0xd4   : > { %293 = vmax.xlane.f32.xlu2 %v292_v46  ;;  %v995_v44 = vsel %vm237_vm8, %v977_v36, -inf  ;;  %v976_v36 = vsel %vm2055_vm1, %v945_v41, -inf }
  0xd6   : > { %v355_v53 = vpop.xlane.xlu1 %354  ;;  %v352_v39 = vpop.xlane.xlu0 %351 }
  0xd7   : > { %v367_v57 = vpop.xlane.xlu2 %366  ;;  %v383_v4 = vperm.slane %v355_v53, %v2108_v2  ;;  %v382_v6 = vperm.slane %v352_v39, %v1448_v3 }
  0xd8   : > { %v389_v7 = vperm.slane %v367_v57, %v2108_v2  ;;  %v842_v57 = vld [vmem:[%s1951_s10 + $0x60] sm:$0xff] }
  0xd9   : > { %v384_v12 = vsel %vm273_vm13, %v383_v4, %v382_v6  ;;  %v948_v4 = vld [vmem:[%s2028_s11 + $0x68] sm:$0xff]  ;;  %v947_v6 = vld [vmem:[%s2028_s11 + $0x60] sm:$0xff] }
  0xda   : > { %v979_v9 = vsel %vm2131_vm0, %v948_v4, -inf }
  0xdb   : > { %783 = vmax.xlane.f32.xlu1 %v782_v54  ;;  %990 = vmax.xlane.f32.xlu0 %v989_v55  ;;  %v1001_v10 = vsel %vm237_vm8, %v979_v9, -inf }
  0xde   : > { %v364_v60 = vpop.xlane.xlu1 %363  ;;  %v361_v19 = vpop.xlane.xlu0 %360 }
  0xdf   : > { %v386_v62 = vperm.slane %v361_v19, %v2108_v2  ;;  %v388_v8 = vperm.slane %v364_v60, %v1448_v3  ;;  %v463_v14 = vpop.xlane.xlu2 %462  ;;  %v873_v60 = vsel %vm1973_vm7, %v842_v57, -inf  ;;  %v769_v19 = vsel %vm1919_vm9, %v738_v58, -inf }
  0xe0   : > { %v490_v31 = vperm.slane %v463_v14, %v1448_v3 }
  0xe1   : > { %v387_v11 = vsel %vm273_vm13, %v386_v62, %v385_v61  ;;  %v390_v5 = vsel %vm273_vm13, %v389_v7, %v388_v8  ;;  %v893_v61 = vsel %vm237_vm8, %v873_v60, -inf  ;;  %v791_v62 = vsel %vm237_vm8, %v769_v19, -inf }
  0xe2   : > { %v394_v16 = vsel %vm284_vm2, %v387_v11, %v384_v12  ;;  %v978_v8 = vsel %vm2055_vm1, %v947_v6, -inf }
  0xe3   : > { %891 = vmax.xlane.f32.xlu1 %v890_v63  ;;  %888 = vmax.xlane.f32.xlu0 %v887_v0  ;;  %v395_v24 = vsel %vm286_vm11, %v390_v5, %v394_v16  ;;  %v998_v11 = vsel %vm237_vm8, %v978_v8, -inf }
  0xe6   : > { %v373_v50 = vpop.xlane.xlu1 %372  ;;  %v370_v15 = vpop.xlane.xlu0 %369 }
  0xe7   : > { %v392_v17 = vperm.slane %v373_v50, %v2108_v2  ;;  %v391_v20 = vperm.slane %v370_v15, %v1448_v3  ;;  %v472_v28 = vpop.xlane.xlu2 %471 }
  0xe8   : > { %v494_v38 = vperm.slane %v472_v28, %v2108_v2 }
  0xe9   : > { %v393_v23 = vsel %vm273_vm13, %v392_v17, %v391_v20 }
  0xea   : > { %v396_v29 = vsel %vm288_vm4, %v393_v23, %v395_v24 }
  0xeb   : > { %687 = vmax.xlane.f32.xlu1 %v686_v22  ;;  %v398_v25 = vsel %vm291_vm12, %v396_v29, -inf  ;;  %996 = vmax.xlane.f32.xlu0 %v995_v44 }
  0xec   : > { %399 = vmax.xlane.f32.xlu2 %v398_v25 }
  0xee   : > { %v460_v26 = vpop.xlane.xlu1 %459  ;;  %v457_v27 = vpop.xlane.xlu0 %456 }
  0xef   : > { %v568_v33 = vpop.xlane.xlu2 %567  ;;  %v488_v34 = vperm.slane %v460_v26, %v2108_v2  ;;  %v487_v37 = vperm.slane %v457_v27, %v1448_v3 }
  0xf0   : > { %v595_v14 = vperm.slane %v568_v33, %v1448_v3 }
  0xf1   : > { %v489_v45 = vsel %vm273_vm13, %v488_v34, %v487_v37 }
  0xf3   : > { %894 = vmax.xlane.f32.xlu1 %v893_v61  ;;  %792 = vmax.xlane.f32.xlu0 %v791_v62 }
  0xf6   : > { %v469_v30 = vpop.xlane.xlu1 %468  ;;  %v466_v32 = vpop.xlane.xlu0 %465 }
  0xf7   : > { %v491_v1 = vperm.slane %v466_v32, %v2108_v2  ;;  %v493_v40 = vperm.slane %v469_v30, %v1448_v3  ;;  %v577_v56 = vpop.xlane.xlu2 %576 }
  0xf8   : > { %v599_v15 = vperm.slane %v577_v56, %v2108_v2  ;;  %v843_v56 = vld [vmem:[%s1951_s10 + $0x68] sm:$0xff] }
  0xf9   : > { %v492_v35 = vsel %vm273_vm13, %v491_v1, %v490_v31  ;;  %v495_v46 = vsel %vm273_vm13, %v494_v38, %v493_v40  ;;  %v736_v1 = vld [vmem:[%s1904_s9 + $0x48] sm:$0xff]  ;;  %v874_v57 = vsel %vm2002_vm3, %v843_v56, -inf }
  0xfa   : > { %v499_v51 = vsel %vm284_vm2, %v492_v35, %v489_v45  ;;  %v767_v34 = vsel %vm1919_vm9, %v736_v1, -inf  ;;  %v992_v45 = vsel %vm237_vm8, %v976_v36, -inf  ;;  %v896_v60 = vsel %vm237_vm8, %v874_v57, -inf }
  0xfb   : > { %v500_v55 = vsel %vm286_vm11, %v495_v46, %v499_v51  ;;  %1002 = vmax.xlane.f32.xlu1 %v1001_v10  ;;  %999 = vmax.xlane.f32.xlu0 %v998_v11  ;;  %v785_v40 = vsel %vm237_vm8, %v767_v34, -inf  ;;  %v768_v51 = vsel %vm2077_vm14, %v737_v48, -inf }
  0xfe   : > { %v478_v47 = vpop.xlane.xlu1 %477  ;;  %v475_v49 = vpop.xlane.xlu0 %474 }
  0xff   : > { %v497_v53 = vperm.slane %v478_v47, %v2108_v2  ;;  %v496_v39 = vperm.slane %v475_v49, %v1448_v3  ;;  %v2218_v7 = vpop.xlane.xlu2 %672 }
 0x101   : > { %v498_v54 = vsel %vm273_vm13, %v497_v53, %v496_v39 }
 0x102   : > { %v501_v43 = vsel %vm288_vm4, %v498_v54, %v500_v55  ;;  %v788_v54 = vsel %vm237_vm8, %v768_v51, -inf  ;;  %vm298_vm8 = vcmask 24576  }
 0x103   : > { %v503_v59 = vsel %vm291_vm12, %v501_v43, -inf }
 0x104   : > { %504 = vmax.xlane.f32.xlu2 %v503_v59 }
 0x106   : > { %v565_v63 = vpop.xlane.xlu1 %564  ;;  %v562_v0 = vpop.xlane.xlu0 %561 }
 0x107   : > { %v593_v50 = vperm.slane %v565_v63, %v2108_v2  ;;  %v592_v21 = vperm.slane %v562_v0, %v1448_v3  ;;  %v2234_v22 = vpop.xlane.xlu2 %681 }
 0x109   : > { %v594_v20 = vsel %vm273_vm13, %v593_v50, %v592_v21 }
 0x10e   : > { %v574_v12 = vpop.xlane.xlu1 %573  ;;  %v571_v13 = vpop.xlane.xlu0 %570 }
 0x10f   : > { %v596_v5 = vperm.slane %v571_v13, %v2108_v2  ;;  %v598_v16 = vperm.slane %v574_v12, %v1448_v3  ;;  %v775_v38 = vpop.xlane.xlu2 %774 }
 0x110   : > { %v803_v47 = vperm.slane %v775_v38, %v2108_v2 }
 0x111   : > { %v597_v17 = vsel %vm273_vm13, %v596_v5, %v595_v14  ;;  %v600_v23 = vsel %vm273_vm13, %v599_v15, %v598_v16 }
 0x112   : > { %v604_v25 = vsel %vm284_vm2, %v597_v17, %v594_v20 }
 0x113   : > { %v605_v30 = vsel %vm286_vm11, %v600_v23, %v604_v25  ;;  %v700_v25 = vperm.slane %v2218_v7, %v1448_v3  ;;  %v704_v7 = vperm.slane %v2234_v22, %v2108_v2 }
 0x116   : > { %v583_v24 = vpop.xlane.xlu1 %582  ;;  %v580_v29 = vpop.xlane.xlu0 %579 }
 0x117   : > { %v602_v26 = vperm.slane %v583_v24, %v2108_v2  ;;  %v601_v27 = vperm.slane %v580_v29, %v1448_v3  ;;  %v877_v46 = vpop.xlane.xlu2 %876 }
 0x118   : > { %v907_v62 = vperm.slane %v877_v46, %v1448_v3 }
 0x119   : > { %v603_v28 = vsel %vm273_vm13, %v602_v26, %v601_v27 }
 0x11a   : > { %v606_v32 = vsel %vm288_vm4, %v603_v28, %v605_v30 }
 0x11b   : > { %v608_v31 = vsel %vm291_vm12, %v606_v32, -inf }
 0x11c   : > { %609 = vmax.xlane.f32.xlu2 %v608_v31 }
 0x11e   : > { %v2245_v33 = vpop.xlane.xlu1 %669  ;;  %v2249_v37 = vpop.xlane.xlu0 %666 }
 0x11f   : > { %v886_v55 = vpop.xlane.xlu2 %885  ;;  %v698_v26 = vperm.slane %v2245_v33, %v2108_v2  ;;  %v697_v30 = vperm.slane %v2249_v37, %v1448_v3 }
 0x120   : > { %v911_v18 = vperm.slane %v886_v55, %v2108_v2 }
 0x121   : > { %v699_v37 = vsel %vm273_vm13, %v698_v26, %v697_v30 }
 0x124   : > { %786 = vmax.xlane.f32.xlu2 %v785_v40 }
 0x126   : > { %v2253_v35 = vpop.xlane.xlu1 %678  ;;  %v2257_v44 = vpop.xlane.xlu0 %675 }
 0x127   : > { %v988_v63 = vpop.xlane.xlu2 %987  ;;  %v701_v32 = vperm.slane %v2257_v44, %v2108_v2  ;;  %v703_v33 = vperm.slane %v2253_v35, %v1448_v3 }
 0x128   : > { %v1015_v15 = vperm.slane %v988_v63, %v1448_v3 }
 0x129   : > { %v702_v40 = vsel %vm273_vm13, %v701_v32, %v700_v25  ;;  %v705_v36 = vsel %vm273_vm13, %v704_v7, %v703_v33 }
 0x12c   : > { %993 = vmax.xlane.f32.xlu2 %v992_v45  ;;  %v709_v45 = vsel %vm284_vm2, %v702_v40, %v699_v37 }
 0x12e   : > { %v772_v49 = vpop.xlane.xlu1 %771  ;;  %v2264_v53 = vpop.xlane.xlu0 %684 }
 0x12f   : > { %v802_v39 = vperm.slane %v772_v49, %v1448_v3  ;;  %v706_v41 = vperm.slane %v2264_v53, %v1448_v3 }
 0x131   : > { %v804_v42 = vsel %vm273_vm13, %v803_v47, %v802_v39  ;;  %v710_v47 = vsel %vm286_vm11, %v705_v36, %v709_v45 }
 0x134   : > { %789 = vmax.xlane.f32.xlu2 %v788_v54 }
 0x136   : > { %v781_v43 = vpop.xlane.xlu1 %780  ;;  %v778_v58 = vpop.xlane.xlu0 %777 }
 0x137   : > { %v806_v52 = vperm.slane %v781_v43, %v2108_v2  ;;  %v805_v59 = vperm.slane %v778_v58, %v1448_v3 }
 0x139   : > { %v807_v19 = vsel %vm273_vm13, %v806_v52, %v805_v59 }
 0x13a   : > { %v2277_v61 = vsel %vm284_vm2, %v807_v19, %v804_v42 }
 0x13c   : > { %897 = vmax.xlane.f32.xlu2 %v896_v60 }
 0x13e   : > { %v883_v0 = vpop.xlane.xlu1 %882  ;;  %v880_v4 = vpop.xlane.xlu0 %879 }
 0x13f   : > { %v910_v6 = vperm.slane %v883_v0, %v1448_v3  ;;  %v908_v9 = vperm.slane %v880_v4, %v2108_v2 }
 0x141   : > { %v912_v8 = vsel %vm273_vm13, %v911_v18, %v910_v6  ;;  %v909_v10 = vsel %vm273_vm13, %v908_v9, %v907_v62 }
 0x142   : > { %v919_v11 = vsel %vm284_vm2, %v912_v8, %v909_v10 }
 0x146   : > { %v985_v12 = vpop.xlane.xlu1 %984  ;;  %v982_v13 = vpop.xlane.xlu0 %981 }
 0x147   : > { %v294_v14 = vpop.xlane.xlu2 %293  ;;  %v1013_v50 = vperm.slane %v985_v12, %v2108_v2  ;;  %v1012_v21 = vperm.slane %v982_v13, %v1448_v3 }
 0x148   : > { %v296_v5 = vperm.slane %v294_v14, %v1448_v3 }
 0x149   : > { %v1014_v23 = vsel %vm273_vm13, %v1013_v50, %v1012_v21 }
 0x14a   : > { %299 = vst.msk [vmem:[%s2291_s12] sm:$0x1] %vm298_vm8, %v296_v5 }
 0x14e   : > { %v784_v16 = vpop.xlane.xlu1 %783  ;;  %v991_v17 = vpop.xlane.xlu0 %990 }
 0x14f   : > { %v1016_v20 = vperm.slane %v991_v17, %v2108_v2  ;;  %v808_v58 = vperm.slane %v784_v16, %v1448_v3 }
 0x151   : > { %v1017_v24 = vsel %vm273_vm13, %v1016_v20, %v1015_v15 }
 0x152   : > { %v1024_v29 = vsel %vm284_vm2, %v1017_v24, %v1014_v23 }
 0x156   : > { %v892_v27 = vpop.xlane.xlu1 %891  ;;  %v889_v28 = vpop.xlane.xlu0 %888 }
 0x157   : > { %v914_v31 = vperm.slane %v892_v27, %v2108_v2  ;;  %v913_v1 = vperm.slane %v889_v28, %v1448_v3 }
 0x159   : > { %v915_v34 = vsel %vm273_vm13, %v914_v31, %v913_v1 }
 0x15a   : > { %v920_v38 = vsel %vm286_vm11, %v915_v34, %v919_v11 }
 0x15e   : > { %v688_v44 = vpop.xlane.xlu1 %687  ;;  %v997_v42 = vpop.xlane.xlu0 %996 }
 0x15f   : > { %v707_v22 = vperm.slane %v688_v44, %v2108_v2  ;;  %v400_v46 = vpop.xlane.xlu2 %399  ;;  %v1019_v0 = vperm.slane %v997_v42, %v2108_v2 }
 0x160   : > { %v402_v35 = vperm.slane %v400_v46, %v1448_v3 }
 0x161   : > { %v708_v48 = vsel %vm273_vm13, %v707_v22, %v706_v41 }
 0x162   : > { %404 = vst.msk [vmem:[%s2291_s12 + $0x1] sm:$0x1] %vm298_vm8, %v402_v35  ;;  %v711_v49 = vsel %vm288_vm4, %v708_v48, %v710_v47 }
 0x163   : > { %v713_v51 = vsel %vm291_vm12, %v711_v49, -inf }
 0x164   : > { %714 = vmax.xlane.f32.xlu2 %v713_v51 }
 0x166   : > { %v895_v56 = vpop.xlane.xlu1 %894  ;;  %v793_v43 = vpop.xlane.xlu0 %792 }
 0x167   : > { %v916_v16 = vperm.slane %v895_v56, %v1448_v3 }
 0x16e   : > { %v1003_v60 = vpop.xlane.xlu1 %1002  ;;  %v1000_v19 = vpop.xlane.xlu0 %999 }
 0x16f   : > { %v1022_v18 = vperm.slane %v1003_v60, %v2108_v2  ;;  %v1021_v63 = vperm.slane %v1000_v19, %v1448_v3 }
 0x171   : > { %v1023_v9 = vsel %vm273_vm13, %v1022_v18, %v1021_v63 }
 0x177   : > { %v505_v53 = vpop.xlane.xlu2 %504 }
 0x178   : > { %v507_v39 = vperm.slane %v505_v53, %v1448_v3 }
 0x17a   : > { %509 = vst.msk [vmem:[%s2291_s12 + $0x2] sm:$0x1] %vm298_vm8, %v507_v39 }
 0x18f   : > { %v610_v54 = vpop.xlane.xlu2 %609 }
 0x190   : > { %v612_v55 = vperm.slane %v610_v54, %v1448_v3 }
 0x192   : > { %614 = vst.msk [vmem:[%s2291_s12 + $0x3] sm:$0x1] %vm298_vm8, %v612_v55 }
 0x197   : > { %v787_v57 = vpop.xlane.xlu2 %786 }
 0x198   : > { %v809_v52 = vperm.slane %v787_v57, %v2108_v2 }
 0x19a   : > { %v810_v59 = vsel %vm273_vm13, %v809_v52, %v808_v58 }
 0x19b   : > { %v815_v62 = vsel %vm286_vm11, %v810_v59, %v2277_v61  ;;  %v812_v61 = vperm.slane %v793_v43, %v2108_v2 }
 0x19f   : > { %v994_v4 = vpop.xlane.xlu2 %993 }
 0x1a0   : > { %v1018_v6 = vperm.slane %v994_v4, %v1448_v3 }
 0x1a2   : > { %v1020_v8 = vsel %vm273_vm13, %v1019_v0, %v1018_v6 }
 0x1a3   : > { %v1025_v10 = vsel %vm286_vm11, %v1020_v8, %v1024_v29 }
 0x1a4   : > { %v1026_v11 = vsel %vm288_vm4, %v1023_v9, %v1025_v10 }
 0x1a5   : > { %v1028_v12 = vsel %vm291_vm12, %v1026_v11, -inf }
 0x1a6   : > { %1029 = vmax.xlane.f32.xlu2 %v1028_v12 }
 0x1a7   : > { %v790_v13 = vpop.xlane.xlu2 %789 }
 0x1a8   : > { %v811_v14 = vperm.slane %v790_v13, %v1448_v3 }
 0x1aa   : > { %v813_v5 = vsel %vm273_vm13, %v812_v61, %v811_v14 }
 0x1ab   : > { %v816_v50 = vsel %vm288_vm4, %v813_v5, %v815_v62 }
 0x1ac   : > { %v818_v21 = vsel %vm291_vm12, %v816_v50, -inf }
 0x1ad   : > { %819 = vmax.xlane.f32.xlu0 %v818_v21 }
 0x1af   : > { %v898_v15 = vpop.xlane.xlu2 %897 }
 0x1b0   : > { %v917_v17 = vperm.slane %v898_v15, %v2108_v2 }
 0x1b2   : > { %v918_v20 = vsel %vm273_vm13, %v917_v17, %v916_v16 }
 0x1b3   : > { %v921_v23 = vsel %vm288_vm4, %v918_v20, %v920_v38 }
 0x1b4   : > { %v923_v24 = vsel %vm291_vm12, %v921_v23, -inf }
 0x1b5   : > { %924 = vmax.xlane.f32.xlu1 %v923_v24 }
 0x1d7   : > { %v715_v29 = vpop.xlane.xlu2 %714 }
 0x1d8   : > { %v717_v25 = vperm.slane %v715_v29, %v1448_v3 }
 0x1da   : > { %719 = vst.msk [vmem:[%s2291_s12 + $0x4] sm:$0x1] %vm298_vm8, %v717_v25 }
 0x219   : > { %v1030_v26 = vpop.xlane.xlu2 %1029 }
 0x21a   : > { %v1032_v27 = vperm.slane %v1030_v26, %v1448_v3 }
 0x21c   : > { %1034 = vst.msk [vmem:[%s2291_s12 + $0x7] sm:$0x1] %vm298_vm8, %v1032_v27 }
 0x220   : > { %v820_v28 = vpop.xlane.xlu0 %819 }
 0x221   : > { %v822_v2 = vperm.slane %v820_v28, %v1448_v3 }
 0x223   : > { %824 = vst.msk [vmem:[%s2291_s12 + $0x5] sm:$0x1] %vm298_vm8, %v822_v2 }
 0x228   : > { %v925_v30 = vpop.xlane.xlu1 %924 }
 0x229   : > { %v927_v32 = vperm.slane %v925_v30, %v1448_v3 }
 0x22b   : > { %929 = vst.msk [vmem:[%s2291_s12 + $0x6] sm:$0x1] %vm298_vm8, %v927_v32 }
 0x22c PF: > { %s29_s23 = sadd.s32 1, %s1311_s23   ;;  %s2496_s20 = smov %s1295_s21 }
 0x22d   : > { %p26_p8 = scmp.ge.s32.totalorder %s29_s23, 4   ;;  %s2497_s21 = smov %s1299_s0 }
 0x22e   : > { %s2498_s0 = smov %s1393_s8  ;;  %s2499_s22 = smov %s1307_s1 }
 0x22f   : > { %s2500_s1 = smov %s2502_s24  ;;  %28 = sbr.rel (!%p26_p8) target bundleno = 11 (0xb), region = 72 }
 0x234   :  { %1060 = vsyncpa [#allocation6], 1 }
 0x235   :  { %1062 = vsyncpa [#allocation6 + $0x1], 1 }

</bundles_post_ra>
